<compile_context>
chip_gen: v6e
topology: v6e:2x2x1
jax: 0.10.0
libtpu: 0.0.40
codegen_flags: <defaults>
</compile_context>

<pallas_src>
import functools

import jax
import jax.numpy as jnp
from jax.experimental import pallas as pl
from jax.experimental.pallas import tpu as pltpu

N_EMBD = 64
N_HEAD = 4
HEAD_SIZE = N_EMBD // N_HEAD
C_PAD = 128                 # lane-padded channel dim
LN_EPS = 1e-5
_NEG_BIG = -1e30            # finite causal-mask fill; no inf-inf NaN on padded rows


def _block_kernel(x_ref,
                  ln1g_ref, ln1b_ref,
                  wqkv_ref, wp_ref, bp_ref,
                  ln2g_ref, ln2b_ref,
                  w1_ref, b1_ref, w2_ref, b2_ref,
                  o_ref,
                  *, seq_len, n_head, n_real):
    M, CP = x_ref.shape          # rows in this block, padded channel dim (128)
    T = seq_len                  # padded sequence length (multiple of 8)
    Bs = M // T                  # whole sequences in this block
    hs = n_real // n_head        # real head size (16)
    cd = wqkv_ref.dtype          # MXU compute dtype (bf16 or f32)
    inv_c = 1.0 / n_real

    x = x_ref[...]               # (M, CP) f32; padded lanes are zero

    def layernorm(v, g, b):
        # Padded lanes of v are exactly zero, so plain sums / n_real give the
        # real-channel moments.  One-pass E[x^2]-E[x]^2 stats (two independent
        # cross-lane reductions).  Padded gamma/beta are zero -> padded lanes of
        # the result are zero.
        s1 = jnp.sum(v, axis=-1, keepdims=True) * inv_c
        s2 = jnp.sum(v * v, axis=-1, keepdims=True) * inv_c
        var = s2 - s1 * s1
        return (v - s1) * jax.lax.rsqrt(var + LN_EPS) * g + b

    # ---------------- self-attention branch (pre-LN) ----------------
    xn = layernorm(x, ln1g_ref[...], ln1b_ref[...])

    # Fused QKV: one (M,CP)@(CP,3CP) MXU push; score scale already folded into
    # the Q columns.  Sections are vreg-aligned: Q=[0,128), K=[128,256), V=[256,384).
    qkv = jnp.dot(xn.astype(cd), wqkv_ref[...],
                  preferred_element_type=jnp.float32)              # (M, 3*CP) f32
    qkv_c = qkv.astype(cd)
    q3 = qkv_c[:, 0 * CP:1 * CP].reshape(Bs, T, CP)
    k3 = qkv_c[:, 1 * CP:2 * CP].reshape(Bs, T, CP)
    v3 = qkv_c[:, 2 * CP:3 * CP].reshape(Bs, T, CP)

    # Additive causal bias shared by every sequence and head; also masks the
    # zero-padded trailing key positions for all real queries.
    row = jax.lax.broadcasted_iota(jnp.int32, (T, T), 0)
    col = jax.lax.broadcasted_iota(jnp.int32, (T, T), 1)
    causal_bias = jnp.where(row >= col, 0.0, _NEG_BIG).astype(jnp.float32)

    # Static loop over the 4 heads; each head is one pair of 3-D einsums batched
    # over all sequences in the block (single batch dim -> clean dot_general),
    # so relayout count and code size do not scale with batch size.
    outs = []
    for h in range(n_head):
        sl = slice(h * hs, (h + 1) * hs)
        s = jnp.einsum('bqd,bkd->bqk', q3[:, :, sl], k3[:, :, sl],
                       preferred_element_type=jnp.float32)         # (Bs, T, T)
        s = s + causal_bias[None, :, :]
        s = s - jnp.max(s, axis=-1, keepdims=True)
        p = jnp.exp(s)
        p = p * pl.reciprocal(jnp.sum(p, axis=-1, keepdims=True), approx=True)
        outs.append(jnp.einsum('bqk,bkd->bqd', p.astype(cd), v3[:, :, sl],
                               preferred_element_type=jnp.float32))  # (Bs, T, hs)
    attn = jnp.concatenate(outs, axis=-1).reshape(M, n_real)        # (M, 64) f32

    sa = jnp.dot(attn.astype(cd), wp_ref[...],
                 preferred_element_type=jnp.float32) + bp_ref[...]
    # attention / projection dropout p = 0.0 -> identity

    x1 = x + sa                                                     # padded lanes stay 0

    # ---------------- feed-forward branch (pre-LN) ----------------
    xn2 = layernorm(x1, ln2g_ref[...], ln2b_ref[...])
    h1 = jnp.dot(xn2.astype(cd), w1_ref[...],
                 preferred_element_type=jnp.float32) + b1_ref[...]
    h1 = jnp.maximum(h1, 0.0)
    ff = jnp.dot(h1.astype(cd), w2_ref[...],
                 preferred_element_type=jnp.float32) + b2_ref[...]

    o_ref[...] = (x1 + ff).astype(o_ref.dtype)


def transformer_block(x, params, *, compute_dtype=jnp.bfloat16,
                      seqs_per_block=None, target_rows_per_block=512):
    """x: (B, T, n_embd) float32.  params: 'math' layout weights (y = x @ W + b).

    compute_dtype: dtype fed to the MXU (bf16 for v6e/v7x peak throughput, f32
    for a tighter numerical match); accumulation is always f32.
    seqs_per_block: sequences per grid step (must divide B).  Default picks the
    largest divisor of B whose padded row count stays under
    target_rows_per_block, keeping the per-step working set far below the v5e
    16 MiB / v7x 32 MiB default scoped VMEM while leaving multiple grid steps
    for pipelining / megacore.
    """
    B, T, C = x.shape
    assert C == N_EMBD
    T_pad = ((T + 7) // 8) * 8                 # sublane (8) rule for the row blocks

    if seqs_per_block is None:
        seqs_per_block = 1
        for d in range(1, B + 1):
            if B % d == 0 and d * T_pad <= max(target_rows_per_block, T_pad):
                seqs_per_block = d
    assert B % seqs_per_block == 0, "seqs_per_block must divide the batch"
    m_blk = seqs_per_block * T_pad
    grid = (B // seqs_per_block,)

    def pad_cols(a):
        return jnp.pad(a, ((0, 0), (0, C_PAD - a.shape[1])))

    def pad_rows(a):
        return jnp.pad(a, ((0, C_PAD - a.shape[0]), (0, 0)))

    # Fused, lane-aligned QKV weight; score scale (n_embd**-0.5, matching the
    # PyTorch module which scales by C = n_embd) folded into the Q columns.
    scale = float(C) ** -0.5
    wqkv = jnp.concatenate([pad_cols(params["wq"] * scale),
                            pad_cols(params["wk"]),
                            pad_cols(params["wv"])], axis=1)
    wqkv = pad_rows(wqkv).astype(compute_dtype)            # (128, 384)
    wp = pad_cols(params["wp"]).astype(compute_dtype)      # (64, 128)
    w1 = pad_rows(params["w1"]).astype(compute_dtype)      # (128, 256)
    w2 = pad_cols(params["w2"]).astype(compute_dtype)      # (256, 128)

    # Zero-padded gamma/beta/bias keep the padded lanes exactly zero everywhere.
    ordered = [pad_cols(params["ln1_g"]), pad_cols(params["ln1_b"]),
               wqkv, wp, pad_cols(params["bp"]),
               pad_cols(params["ln2_g"]), pad_cols(params["ln2_b"]),
               w1, params["b1"], w2, pad_cols(params["b2"])]

    xp = jnp.pad(x, ((0, 0), (0, T_pad - T), (0, C_PAD - C)))
    xp = xp.reshape(B * T_pad, C_PAD)          # lane-dense 2-D slab

    kernel = functools.partial(_block_kernel, seq_len=T_pad,
                               n_head=N_HEAD, n_real=C)

    out = pl.pallas_call(
        kernel,
        out_shape=jax.ShapeDtypeStruct((B * T_pad, C_PAD), jnp.float32),
        grid_spec=pltpu.PrefetchScalarGridSpec(
            num_scalar_prefetch=0,
            grid=grid,
            in_specs=[pl.BlockSpec((m_blk, C_PAD), lambda i: (i, 0))]
                     + [pl.BlockSpec(a.shape, lambda i: (0, 0)) for a in ordered],
            out_specs=pl.BlockSpec((m_blk, C_PAD), lambda i: (i, 0)),
        ),
        compiler_params=pltpu.CompilerParams(
            dimension_semantics=("parallel",)),
    )(xp, *ordered)

    return out.reshape(B, T_pad, C_PAD)[:, :T, :C]


def init_params(key):
    ks = jax.random.split(key, 8)
    s = 0.02
    C, H4 = N_EMBD, 4 * N_EMBD
    return {
        "ln1_g": jnp.ones((1, C), jnp.float32),
        "ln1_b": jnp.zeros((1, C), jnp.float32),
        # per-head q/k/v weights packed column-wise: head h -> cols [h*hs, (h+1)*hs)
        "wq": jax.random.normal(ks[0], (C, C), jnp.float32) * s,
        "wk": jax.random.normal(ks[1], (C, C), jnp.float32) * s,
        "wv": jax.random.normal(ks[2], (C, C), jnp.float32) * s,
        "wp": jax.random.normal(ks[3], (C, C), jnp.float32) * s,
        "bp": jax.random.normal(ks[4], (1, C), jnp.float32) * s,
        "ln2_g": jnp.ones((1, C), jnp.float32),
        "ln2_b": jnp.zeros((1, C), jnp.float32),
        "w1": jax.random.normal(ks[5], (C, H4), jnp.float32) * s,
        "b1": jnp.zeros((1, H4), jnp.float32),
        "w2": jax.random.normal(ks[6], (H4, C), jnp.float32) * s,
        "b2": jnp.zeros((1, C), jnp.float32),
    }


def reference_block(x, p):
    """Pure-JAX reference mirroring the PyTorch forward semantics."""
    B, T, C = x.shape

    def ln(v, g, b):
        mu = jnp.mean(v, axis=-1, keepdims=True)
        var = jnp.mean((v - mu) ** 2, axis=-1, keepdims=True)
        return (v - mu) / jnp.sqrt(var + LN_EPS) * g + b

    xn = ln(x, p["ln1_g"][0], p["ln1_b"][0])
    q = xn @ p["wq"]
    k = xn @ p["wk"]
    v = xn @ p["wv"]
    mask = jnp.tril(jnp.ones((T, T), bool))
    outs = []
    for h in range(N_HEAD):
        sl = slice(h * HEAD_SIZE, (h + 1) * HEAD_SIZE)
        wei = (q[..., sl] @ jnp.swapaxes(k[..., sl], -1, -2)) * (C ** -0.5)
        wei = jnp.where(mask, wei, -jnp.inf)
        wei = jax.nn.softmax(wei, axis=-1)
        outs.append(wei @ v[..., sl])
    sa = jnp.concatenate(outs, axis=-1) @ p["wp"] + p["bp"][0]
    x1 = x + sa
    xn2 = ln(x1, p["ln2_g"][0], p["ln2_b"][0])
    ff = jnp.maximum(xn2 @ p["w1"] + p["b1"][0], 0.0) @ p["w2"] + p["b2"][0]
    return x1 + ff


if __name__ == "__main__":
    key = jax.random.PRNGKey(0)
    kx1, kx2, kp = jax.random.split(key, 3)

    params = init_params(kp)

    # Config 1: T multiple of 8, f32 MXU path, one sequence per grid step
    # (grid=(2,)) to exercise the row tiling / index_map.
    B1, T1 = 2, 8
    x1 = jax.random.normal(kx1, (B1, T1, N_EMBD), jnp.float32)
    out1 = jax.block_until_ready(
        transformer_block(x1, params, compute_dtype=jnp.float32, seqs_per_block=1))
    ref1 = reference_block(x1, params)
    assert out1.shape == (B1, T1, N_EMBD)
    # tolerance covers approx-reciprocal softmax, one-pass LN stats and the
    # default-precision MXU matmul passes (the reference uses them too)
    assert jnp.allclose(out1, ref1, atol=5e-3, rtol=5e-3), "f32 path mismatch"

    # Config 2: odd T (exercises seq padding to a multiple of 8), bf16 MXU path,
    # both sequences packed into a single block (grid=(1,)).
    B2, T2 = 2, 7
    x2 = jax.random.normal(kx2, (B2, T2, N_EMBD), jnp.float32)
    out2 = jax.block_until_ready(
        transformer_block(x2, params, compute_dtype=jnp.bfloat16, seqs_per_block=2))
    ref2 = reference_block(x2, params)
    assert out2.shape == (B2, T2, N_EMBD)
    assert jnp.allclose(out2, ref2, atol=2e-2, rtol=2e-2), "bf16 path mismatch"

    print("KERNEL_OK")
</pallas_src>

<mosaic_0001>
module attributes {stable_mosaic.version = 11 : i64} {
  func.func @_block_kernel(%arg0: i32, %arg1: memref<8x128xf32, #tpu.memory_space<vmem>>, %arg2: memref<1x128xf32, #tpu.memory_space<vmem>>, %arg3: memref<1x128xf32, #tpu.memory_space<vmem>>, %arg4: memref<128x384xf32, #tpu.memory_space<vmem>>, %arg5: memref<64x128xf32, #tpu.memory_space<vmem>>, %arg6: memref<1x128xf32, #tpu.memory_space<vmem>>, %arg7: memref<1x128xf32, #tpu.memory_space<vmem>>, %arg8: memref<1x128xf32, #tpu.memory_space<vmem>>, %arg9: memref<128x256xf32, #tpu.memory_space<vmem>>, %arg10: memref<1x256xf32, #tpu.memory_space<vmem>>, %arg11: memref<256x128xf32, #tpu.memory_space<vmem>>, %arg12: memref<1x128xf32, #tpu.memory_space<vmem>>, %arg13: memref<8x128xf32, #tpu.memory_space<vmem>>) attributes {dimension_semantics = [#tpu.dimension_semantics<parallel>], iteration_bounds = array<i64: 2>, scalar_prefetch = 0 : i64, scratch_operands = 0 : i64, tpu.core_type = #tpu.core_type<tc>, window_params = [{transform_indices = @transform_0, window_bounds = array<i64: 8, 128>}, {pipeline_mode = #tpu.pipeline_mode<synchronous>, transform_indices = @transform_1, window_bounds = array<i64: 1, 128>}, {pipeline_mode = #tpu.pipeline_mode<synchronous>, transform_indices = @transform_2, window_bounds = array<i64: 1, 128>}, {pipeline_mode = #tpu.pipeline_mode<synchronous>, transform_indices = @transform_3, window_bounds = array<i64: 128, 384>}, {pipeline_mode = #tpu.pipeline_mode<synchronous>, transform_indices = @transform_4, window_bounds = array<i64: 64, 128>}, {pipeline_mode = #tpu.pipeline_mode<synchronous>, transform_indices = @transform_5, window_bounds = array<i64: 1, 128>}, {pipeline_mode = #tpu.pipeline_mode<synchronous>, transform_indices = @transform_6, window_bounds = array<i64: 1, 128>}, {pipeline_mode = #tpu.pipeline_mode<synchronous>, transform_indices = @transform_7, window_bounds = array<i64: 1, 128>}, {pipeline_mode = #tpu.pipeline_mode<synchronous>, transform_indices = @transform_8, window_bounds = array<i64: 128, 256>}, {pipeline_mode = #tpu.pipeline_mode<synchronous>, transform_indices = @transform_9, window_bounds = array<i64: 1, 256>}, {pipeline_mode = #tpu.pipeline_mode<synchronous>, transform_indices = @transform_10, window_bounds = array<i64: 256, 128>}, {pipeline_mode = #tpu.pipeline_mode<synchronous>, transform_indices = @transform_11, window_bounds = array<i64: 1, 128>}, {transform_indices = @transform_12, window_bounds = array<i64: 8, 128>}]} {
    %c0 = arith.constant 0 : index
    %c0_0 = arith.constant 0 : index
    %0 = vector.load %arg1[%c0, %c0_0] : memref<8x128xf32, #tpu.memory_space<vmem>>, vector<8x128xf32>
    %c0_1 = arith.constant 0 : index
    %c0_2 = arith.constant 0 : index
    %1 = vector.load %arg2[%c0_1, %c0_2] : memref<1x128xf32, #tpu.memory_space<vmem>>, vector<1x128xf32>
    %c0_3 = arith.constant 0 : index
    %c0_4 = arith.constant 0 : index
    %2 = vector.load %arg3[%c0_3, %c0_4] : memref<1x128xf32, #tpu.memory_space<vmem>>, vector<1x128xf32>
    %cst = arith.constant dense<0.000000e+00> : vector<8xf32>
    %3 = vector.multi_reduction <add>, %0, %cst [1] : vector<8x128xf32> to vector<8xf32>
    %4 = vector.shape_cast %3 : vector<8xf32> to vector<8x1xf32>
    %cst_5 = arith.constant 1.562500e-02 : f32
    %5 = vector.broadcast %cst_5 : f32 to vector<8x1xf32>
    %6 = arith.mulf %4, %5 : vector<8x1xf32>
    %7 = arith.mulf %0, %0 : vector<8x128xf32>
    %cst_6 = arith.constant dense<0.000000e+00> : vector<8xf32>
    %8 = vector.multi_reduction <add>, %7, %cst_6 [1] : vector<8x128xf32> to vector<8xf32>
    %9 = vector.shape_cast %8 : vector<8xf32> to vector<8x1xf32>
    %cst_7 = arith.constant 1.562500e-02 : f32
    %10 = vector.broadcast %cst_7 : f32 to vector<8x1xf32>
    %11 = arith.mulf %9, %10 : vector<8x1xf32>
    %12 = arith.mulf %6, %6 : vector<8x1xf32>
    %13 = arith.subf %11, %12 : vector<8x1xf32>
    %14 = vector.broadcast %6 : vector<8x1xf32> to vector<8x128xf32>
    %15 = arith.subf %0, %14 : vector<8x128xf32>
    %cst_8 = arith.constant 9.99999974E-6 : f32
    %16 = vector.broadcast %cst_8 : f32 to vector<8x1xf32>
    %17 = arith.addf %13, %16 : vector<8x1xf32>
    %18 = math.rsqrt %17 : vector<8x1xf32>
    %19 = vector.broadcast %18 : vector<8x1xf32> to vector<8x128xf32>
    %20 = arith.mulf %15, %19 : vector<8x128xf32>
    %21 = vector.broadcast %1 : vector<1x128xf32> to vector<8x128xf32>
    %22 = arith.mulf %20, %21 : vector<8x128xf32>
    %23 = vector.broadcast %2 : vector<1x128xf32> to vector<8x128xf32>
    %24 = arith.addf %22, %23 : vector<8x128xf32>
    %c0_9 = arith.constant 0 : index
    %c0_10 = arith.constant 0 : index
    %25 = vector.load %arg4[%c0_9, %c0_10] : memref<128x384xf32, #tpu.memory_space<vmem>>, vector<128x384xf32>
    %cst_11 = arith.constant dense<0.000000e+00> : vector<8x384xf32>
    %26 = tpu.matmul %24, %25, %cst_11 {dimension_numbers = #tpu.dot_dimension_numbers<[1], [0], [0], [1], [0, 0, 1, 1], [], []>} : vector<8x128xf32>, vector<128x384xf32>, vector<8x384xf32> -> vector<8x384xf32>
    %27 = vector.extract_strided_slice %26 {offsets = [0, 0], sizes = [8, 128], strides = [1, 1]} : vector<8x384xf32> to vector<8x128xf32>
    %28 = vector.shape_cast %27 : vector<8x128xf32> to vector<1x8x128xf32>
    %29 = vector.extract_strided_slice %26 {offsets = [0, 128], sizes = [8, 128], strides = [1, 1]} : vector<8x384xf32> to vector<8x128xf32>
    %30 = vector.shape_cast %29 : vector<8x128xf32> to vector<1x8x128xf32>
    %31 = vector.extract_strided_slice %26 {offsets = [0, 256], sizes = [8, 128], strides = [1, 1]} : vector<8x384xf32> to vector<8x128xf32>
    %32 = vector.shape_cast %31 : vector<8x128xf32> to vector<1x8x128xf32>
    %33 = tpu.iota {dimensions = array<i32: 0>} : vector<8x8xi32>
    %34 = tpu.iota {dimensions = array<i32: 1>} : vector<8x8xi32>
    %35 = arith.cmpi sge, %33, %34 : vector<8x8xi32>
    %cst_12 = arith.constant 0.000000e+00 : f32
    %cst_13 = arith.constant -1.000000e+30 : f32
    %36 = vector.broadcast %cst_12 : f32 to vector<8x8xf32>
    %37 = vector.broadcast %cst_13 : f32 to vector<8x8xf32>
    %38 = arith.select %35, %36, %37 : vector<8x8xi1>, vector<8x8xf32>
    %39 = vector.extract_strided_slice %28 {offsets = [0, 0, 0], sizes = [1, 8, 16], strides = [1, 1, 1]} : vector<1x8x128xf32> to vector<1x8x16xf32>
    %40 = vector.extract_strided_slice %30 {offsets = [0, 0, 0], sizes = [1, 8, 16], strides = [1, 1, 1]} : vector<1x8x128xf32> to vector<1x8x16xf32>
    "tpu.trace_start"() <{level = 10 : i32, message = "bqd,bkd->bqk"}> : () -> ()
    %cst_14 = arith.constant dense<0.000000e+00> : vector<1x8x8xf32>
    %41 = tpu.matmul %39, %40, %cst_14 {dimension_numbers = #tpu.dot_dimension_numbers<[2], [2], [1], [1], [0, 0, 0, 1, 1, 1], [0], [0]>} : vector<1x8x16xf32>, vector<1x8x16xf32>, vector<1x8x8xf32> -> vector<1x8x8xf32>
    "tpu.trace_stop"() : () -> ()
    %42 = vector.shape_cast %38 : vector<8x8xf32> to vector<1x8x8xf32>
    %43 = arith.addf %41, %42 : vector<1x8x8xf32>
    %cst_15 = arith.constant dense<0xFF800000> : vector<1x8xf32>
    %44 = vector.multi_reduction <maximumf>, %43, %cst_15 [2] : vector<1x8x8xf32> to vector<1x8xf32>
    %45 = vector.shape_cast %44 : vector<1x8xf32> to vector<1x8x1xf32>
    %46 = vector.broadcast %45 : vector<1x8x1xf32> to vector<1x8x8xf32>
    %47 = arith.subf %43, %46 : vector<1x8x8xf32>
    %48 = math.exp %47 : vector<1x8x8xf32>
    %cst_16 = arith.constant dense<0.000000e+00> : vector<1x8xf32>
    %49 = vector.multi_reduction <add>, %48, %cst_16 [2] : vector<1x8x8xf32> to vector<1x8xf32>
    %50 = vector.shape_cast %49 : vector<1x8xf32> to vector<1x8x1xf32>
    %51 = tpu.reciprocal %50 {approx = true} : vector<1x8x1xf32> -> vector<1x8x1xf32>
    %52 = vector.broadcast %51 : vector<1x8x1xf32> to vector<1x8x8xf32>
    %53 = arith.mulf %48, %52 : vector<1x8x8xf32>
    %54 = vector.extract_strided_slice %32 {offsets = [0, 0, 0], sizes = [1, 8, 16], strides = [1, 1, 1]} : vector<1x8x128xf32> to vector<1x8x16xf32>
    "tpu.trace_start"() <{level = 10 : i32, message = "bqk,bkd->bqd"}> : () -> ()
    %cst_17 = arith.constant dense<0.000000e+00> : vector<1x8x16xf32>
    %55 = tpu.matmul %53, %54, %cst_17 {dimension_numbers = #tpu.dot_dimension_numbers<[2], [1], [1], [2], [0, 0, 0, 1, 1, 2], [0], [0]>} : vector<1x8x8xf32>, vector<1x8x16xf32>, vector<1x8x16xf32> -> vector<1x8x16xf32>
    "tpu.trace_stop"() : () -> ()
    %56 = vector.extract_strided_slice %28 {offsets = [0, 0, 16], sizes = [1, 8, 16], strides = [1, 1, 1]} : vector<1x8x128xf32> to vector<1x8x16xf32>
    %57 = vector.extract_strided_slice %30 {offsets = [0, 0, 16], sizes = [1, 8, 16], strides = [1, 1, 1]} : vector<1x8x128xf32> to vector<1x8x16xf32>
    "tpu.trace_start"() <{level = 10 : i32, message = "bqd,bkd->bqk"}> : () -> ()
    %cst_18 = arith.constant dense<0.000000e+00> : vector<1x8x8xf32>
    %58 = tpu.matmul %56, %57, %cst_18 {dimension_numbers = #tpu.dot_dimension_numbers<[2], [2], [1], [1], [0, 0, 0, 1, 1, 1], [0], [0]>} : vector<1x8x16xf32>, vector<1x8x16xf32>, vector<1x8x8xf32> -> vector<1x8x8xf32>
    "tpu.trace_stop"() : () -> ()
    %59 = vector.shape_cast %38 : vector<8x8xf32> to vector<1x8x8xf32>
    %60 = arith.addf %58, %59 : vector<1x8x8xf32>
    %cst_19 = arith.constant dense<0xFF800000> : vector<1x8xf32>
    %61 = vector.multi_reduction <maximumf>, %60, %cst_19 [2] : vector<1x8x8xf32> to vector<1x8xf32>
    %62 = vector.shape_cast %61 : vector<1x8xf32> to vector<1x8x1xf32>
    %63 = vector.broadcast %62 : vector<1x8x1xf32> to vector<1x8x8xf32>
    %64 = arith.subf %60, %63 : vector<1x8x8xf32>
    %65 = math.exp %64 : vector<1x8x8xf32>
    %cst_20 = arith.constant dense<0.000000e+00> : vector<1x8xf32>
    %66 = vector.multi_reduction <add>, %65, %cst_20 [2] : vector<1x8x8xf32> to vector<1x8xf32>
    %67 = vector.shape_cast %66 : vector<1x8xf32> to vector<1x8x1xf32>
    %68 = tpu.reciprocal %67 {approx = true} : vector<1x8x1xf32> -> vector<1x8x1xf32>
    %69 = vector.broadcast %68 : vector<1x8x1xf32> to vector<1x8x8xf32>
    %70 = arith.mulf %65, %69 : vector<1x8x8xf32>
    %71 = vector.extract_strided_slice %32 {offsets = [0, 0, 16], sizes = [1, 8, 16], strides = [1, 1, 1]} : vector<1x8x128xf32> to vector<1x8x16xf32>
    "tpu.trace_start"() <{level = 10 : i32, message = "bqk,bkd->bqd"}> : () -> ()
    %cst_21 = arith.constant dense<0.000000e+00> : vector<1x8x16xf32>
    %72 = tpu.matmul %70, %71, %cst_21 {dimension_numbers = #tpu.dot_dimension_numbers<[2], [1], [1], [2], [0, 0, 0, 1, 1, 2], [0], [0]>} : vector<1x8x8xf32>, vector<1x8x16xf32>, vector<1x8x16xf32> -> vector<1x8x16xf32>
    "tpu.trace_stop"() : () -> ()
    %73 = vector.extract_strided_slice %28 {offsets = [0, 0, 32], sizes = [1, 8, 16], strides = [1, 1, 1]} : vector<1x8x128xf32> to vector<1x8x16xf32>
    %74 = vector.extract_strided_slice %30 {offsets = [0, 0, 32], sizes = [1, 8, 16], strides = [1, 1, 1]} : vector<1x8x128xf32> to vector<1x8x16xf32>
    "tpu.trace_start"() <{level = 10 : i32, message = "bqd,bkd->bqk"}> : () -> ()
    %cst_22 = arith.constant dense<0.000000e+00> : vector<1x8x8xf32>
    %75 = tpu.matmul %73, %74, %cst_22 {dimension_numbers = #tpu.dot_dimension_numbers<[2], [2], [1], [1], [0, 0, 0, 1, 1, 1], [0], [0]>} : vector<1x8x16xf32>, vector<1x8x16xf32>, vector<1x8x8xf32> -> vector<1x8x8xf32>
    "tpu.trace_stop"() : () -> ()
    %76 = vector.shape_cast %38 : vector<8x8xf32> to vector<1x8x8xf32>
    %77 = arith.addf %75, %76 : vector<1x8x8xf32>
    %cst_23 = arith.constant dense<0xFF800000> : vector<1x8xf32>
    %78 = vector.multi_reduction <maximumf>, %77, %cst_23 [2] : vector<1x8x8xf32> to vector<1x8xf32>
    %79 = vector.shape_cast %78 : vector<1x8xf32> to vector<1x8x1xf32>
    %80 = vector.broadcast %79 : vector<1x8x1xf32> to vector<1x8x8xf32>
    %81 = arith.subf %77, %80 : vector<1x8x8xf32>
    %82 = math.exp %81 : vector<1x8x8xf32>
    %cst_24 = arith.constant dense<0.000000e+00> : vector<1x8xf32>
    %83 = vector.multi_reduction <add>, %82, %cst_24 [2] : vector<1x8x8xf32> to vector<1x8xf32>
    %84 = vector.shape_cast %83 : vector<1x8xf32> to vector<1x8x1xf32>
    %85 = tpu.reciprocal %84 {approx = true} : vector<1x8x1xf32> -> vector<1x8x1xf32>
    %86 = vector.broadcast %85 : vector<1x8x1xf32> to vector<1x8x8xf32>
    %87 = arith.mulf %82, %86 : vector<1x8x8xf32>
    %88 = vector.extract_strided_slice %32 {offsets = [0, 0, 32], sizes = [1, 8, 16], strides = [1, 1, 1]} : vector<1x8x128xf32> to vector<1x8x16xf32>
    "tpu.trace_start"() <{level = 10 : i32, message = "bqk,bkd->bqd"}> : () -> ()
    %cst_25 = arith.constant dense<0.000000e+00> : vector<1x8x16xf32>
    %89 = tpu.matmul %87, %88, %cst_25 {dimension_numbers = #tpu.dot_dimension_numbers<[2], [1], [1], [2], [0, 0, 0, 1, 1, 2], [0], [0]>} : vector<1x8x8xf32>, vector<1x8x16xf32>, vector<1x8x16xf32> -> vector<1x8x16xf32>
    "tpu.trace_stop"() : () -> ()
    %90 = vector.extract_strided_slice %28 {offsets = [0, 0, 48], sizes = [1, 8, 16], strides = [1, 1, 1]} : vector<1x8x128xf32> to vector<1x8x16xf32>
    %91 = vector.extract_strided_slice %30 {offsets = [0, 0, 48], sizes = [1, 8, 16], strides = [1, 1, 1]} : vector<1x8x128xf32> to vector<1x8x16xf32>
    "tpu.trace_start"() <{level = 10 : i32, message = "bqd,bkd->bqk"}> : () -> ()
    %cst_26 = arith.constant dense<0.000000e+00> : vector<1x8x8xf32>
    %92 = tpu.matmul %90, %91, %cst_26 {dimension_numbers = #tpu.dot_dimension_numbers<[2], [2], [1], [1], [0, 0, 0, 1, 1, 1], [0], [0]>} : vector<1x8x16xf32>, vector<1x8x16xf32>, vector<1x8x8xf32> -> vector<1x8x8xf32>
    "tpu.trace_stop"() : () -> ()
    %93 = vector.shape_cast %38 : vector<8x8xf32> to vector<1x8x8xf32>
    %94 = arith.addf %92, %93 : vector<1x8x8xf32>
    %cst_27 = arith.constant dense<0xFF800000> : vector<1x8xf32>
    %95 = vector.multi_reduction <maximumf>, %94, %cst_27 [2] : vector<1x8x8xf32> to vector<1x8xf32>
    %96 = vector.shape_cast %95 : vector<1x8xf32> to vector<1x8x1xf32>
    %97 = vector.broadcast %96 : vector<1x8x1xf32> to vector<1x8x8xf32>
    %98 = arith.subf %94, %97 : vector<1x8x8xf32>
    %99 = math.exp %98 : vector<1x8x8xf32>
    %cst_28 = arith.constant dense<0.000000e+00> : vector<1x8xf32>
    %100 = vector.multi_reduction <add>, %99, %cst_28 [2] : vector<1x8x8xf32> to vector<1x8xf32>
    %101 = vector.shape_cast %100 : vector<1x8xf32> to vector<1x8x1xf32>
    %102 = tpu.reciprocal %101 {approx = true} : vector<1x8x1xf32> -> vector<1x8x1xf32>
    %103 = vector.broadcast %102 : vector<1x8x1xf32> to vector<1x8x8xf32>
    %104 = arith.mulf %99, %103 : vector<1x8x8xf32>
    %105 = vector.extract_strided_slice %32 {offsets = [0, 0, 48], sizes = [1, 8, 16], strides = [1, 1, 1]} : vector<1x8x128xf32> to vector<1x8x16xf32>
    "tpu.trace_start"() <{level = 10 : i32, message = "bqk,bkd->bqd"}> : () -> ()
    %cst_29 = arith.constant dense<0.000000e+00> : vector<1x8x16xf32>
    %106 = tpu.matmul %104, %105, %cst_29 {dimension_numbers = #tpu.dot_dimension_numbers<[2], [1], [1], [2], [0, 0, 0, 1, 1, 2], [0], [0]>} : vector<1x8x8xf32>, vector<1x8x16xf32>, vector<1x8x16xf32> -> vector<1x8x16xf32>
    "tpu.trace_stop"() : () -> ()
    %107 = tpu.concatenate %55, %72, %89, %106 in 2 : vector<1x8x16xf32>, vector<1x8x16xf32>, vector<1x8x16xf32>, vector<1x8x16xf32> -> vector<1x8x64xf32>
    %108 = vector.shape_cast %107 : vector<1x8x64xf32> to vector<8x64xf32>
    %c0_30 = arith.constant 0 : index
    %c0_31 = arith.constant 0 : index
    %109 = vector.load %arg5[%c0_30, %c0_31] : memref<64x128xf32, #tpu.memory_space<vmem>>, vector<64x128xf32>
    %cst_32 = arith.constant dense<0.000000e+00> : vector<8x128xf32>
    %110 = tpu.matmul %108, %109, %cst_32 {dimension_numbers = #tpu.dot_dimension_numbers<[1], [0], [0], [1], [0, 0, 1, 1], [], []>} : vector<8x64xf32>, vector<64x128xf32>, vector<8x128xf32> -> vector<8x128xf32>
    %c0_33 = arith.constant 0 : index
    %c0_34 = arith.constant 0 : index
    %111 = vector.load %arg6[%c0_33, %c0_34] : memref<1x128xf32, #tpu.memory_space<vmem>>, vector<1x128xf32>
    %112 = vector.broadcast %111 : vector<1x128xf32> to vector<8x128xf32>
    %113 = arith.addf %110, %112 : vector<8x128xf32>
    %114 = arith.addf %0, %113 : vector<8x128xf32>
    %c0_35 = arith.constant 0 : index
    %c0_36 = arith.constant 0 : index
    %115 = vector.load %arg7[%c0_35, %c0_36] : memref<1x128xf32, #tpu.memory_space<vmem>>, vector<1x128xf32>
    %c0_37 = arith.constant 0 : index
    %c0_38 = arith.constant 0 : index
    %116 = vector.load %arg8[%c0_37, %c0_38] : memref<1x128xf32, #tpu.memory_space<vmem>>, vector<1x128xf32>
    %cst_39 = arith.constant dense<0.000000e+00> : vector<8xf32>
    %117 = vector.multi_reduction <add>, %114, %cst_39 [1] : vector<8x128xf32> to vector<8xf32>
    %118 = vector.shape_cast %117 : vector<8xf32> to vector<8x1xf32>
    %cst_40 = arith.constant 1.562500e-02 : f32
    %119 = vector.broadcast %cst_40 : f32 to vector<8x1xf32>
    %120 = arith.mulf %118, %119 : vector<8x1xf32>
    %121 = arith.mulf %114, %114 : vector<8x128xf32>
    %cst_41 = arith.constant dense<0.000000e+00> : vector<8xf32>
    %122 = vector.multi_reduction <add>, %121, %cst_41 [1] : vector<8x128xf32> to vector<8xf32>
    %123 = vector.shape_cast %122 : vector<8xf32> to vector<8x1xf32>
    %cst_42 = arith.constant 1.562500e-02 : f32
    %124 = vector.broadcast %cst_42 : f32 to vector<8x1xf32>
    %125 = arith.mulf %123, %124 : vector<8x1xf32>
    %126 = arith.mulf %120, %120 : vector<8x1xf32>
    %127 = arith.subf %125, %126 : vector<8x1xf32>
    %128 = vector.broadcast %120 : vector<8x1xf32> to vector<8x128xf32>
    %129 = arith.subf %114, %128 : vector<8x128xf32>
    %cst_43 = arith.constant 9.99999974E-6 : f32
    %130 = vector.broadcast %cst_43 : f32 to vector<8x1xf32>
    %131 = arith.addf %127, %130 : vector<8x1xf32>
    %132 = math.rsqrt %131 : vector<8x1xf32>
    %133 = vector.broadcast %132 : vector<8x1xf32> to vector<8x128xf32>
    %134 = arith.mulf %129, %133 : vector<8x128xf32>
    %135 = vector.broadcast %115 : vector<1x128xf32> to vector<8x128xf32>
    %136 = arith.mulf %134, %135 : vector<8x128xf32>
    %137 = vector.broadcast %116 : vector<1x128xf32> to vector<8x128xf32>
    %138 = arith.addf %136, %137 : vector<8x128xf32>
    %c0_44 = arith.constant 0 : index
    %c0_45 = arith.constant 0 : index
    %139 = vector.load %arg9[%c0_44, %c0_45] : memref<128x256xf32, #tpu.memory_space<vmem>>, vector<128x256xf32>
    %cst_46 = arith.constant dense<0.000000e+00> : vector<8x256xf32>
    %140 = tpu.matmul %138, %139, %cst_46 {dimension_numbers = #tpu.dot_dimension_numbers<[1], [0], [0], [1], [0, 0, 1, 1], [], []>} : vector<8x128xf32>, vector<128x256xf32>, vector<8x256xf32> -> vector<8x256xf32>
    %c0_47 = arith.constant 0 : index
    %c0_48 = arith.constant 0 : index
    %141 = vector.load %arg10[%c0_47, %c0_48] : memref<1x256xf32, #tpu.memory_space<vmem>>, vector<1x256xf32>
    %142 = vector.broadcast %141 : vector<1x256xf32> to vector<8x256xf32>
    %143 = arith.addf %140, %142 : vector<8x256xf32>
    %cst_49 = arith.constant 0.000000e+00 : f32
    %144 = vector.broadcast %cst_49 : f32 to vector<8x256xf32>
    %145 = arith.maximumf %143, %144 : vector<8x256xf32>
    %c0_50 = arith.constant 0 : index
    %c0_51 = arith.constant 0 : index
    %146 = vector.load %arg11[%c0_50, %c0_51] : memref<256x128xf32, #tpu.memory_space<vmem>>, vector<256x128xf32>
    %cst_52 = arith.constant dense<0.000000e+00> : vector<8x128xf32>
    %147 = tpu.matmul %145, %146, %cst_52 {dimension_numbers = #tpu.dot_dimension_numbers<[1], [0], [0], [1], [0, 0, 1, 1], [], []>} : vector<8x256xf32>, vector<256x128xf32>, vector<8x128xf32> -> vector<8x128xf32>
    %c0_53 = arith.constant 0 : index
    %c0_54 = arith.constant 0 : index
    %148 = vector.load %arg12[%c0_53, %c0_54] : memref<1x128xf32, #tpu.memory_space<vmem>>, vector<1x128xf32>
    %149 = vector.broadcast %148 : vector<1x128xf32> to vector<8x128xf32>
    %150 = arith.addf %147, %149 : vector<8x128xf32>
    %151 = arith.addf %114, %150 : vector<8x128xf32>
    %c0_55 = arith.constant 0 : index
    %c0_56 = arith.constant 0 : index
    %152 = vector.load %arg13[%c0_55, %c0_56] : memref<8x128xf32, #tpu.memory_space<vmem>>, vector<8x128xf32>
    tpu.vector_store %arg13[%c0_55, %c0_56], %151 {strides = array<i32>} : memref<8x128xf32, #tpu.memory_space<vmem>>, vector<8x128xf32>,
    return
  }
  func.func @transform_0(%arg0: i32) -> (i32, i32) {
    %c0_i32 = arith.constant 0 : i32
    %c0_i32_0 = arith.constant 0 : i32
    return %arg0, %c0_i32 : i32, i32
  }
  func.func @transform_1(%arg0: i32) -> (i32, i32) {
    %c0_i32 = arith.constant 0 : i32
    %c0_i32_0 = arith.constant 0 : i32
    %c0_i32_1 = arith.constant 0 : i32
    return %c0_i32, %c0_i32_0 : i32, i32
  }
  func.func @transform_2(%arg0: i32) -> (i32, i32) {
    %c0_i32 = arith.constant 0 : i32
    %c0_i32_0 = arith.constant 0 : i32
    %c0_i32_1 = arith.constant 0 : i32
    return %c0_i32, %c0_i32_0 : i32, i32
  }
  func.func @transform_3(%arg0: i32) -> (i32, i32) {
    %c0_i32 = arith.constant 0 : i32
    %c0_i32_0 = arith.constant 0 : i32
    %c0_i32_1 = arith.constant 0 : i32
    return %c0_i32, %c0_i32_0 : i32, i32
  }
  func.func @transform_4(%arg0: i32) -> (i32, i32) {
    %c0_i32 = arith.constant 0 : i32
    %c0_i32_0 = arith.constant 0 : i32
    %c0_i32_1 = arith.constant 0 : i32
    return %c0_i32, %c0_i32_0 : i32, i32
  }
  func.func @transform_5(%arg0: i32) -> (i32, i32) {
    %c0_i32 = arith.constant 0 : i32
    %c0_i32_0 = arith.constant 0 : i32
    %c0_i32_1 = arith.constant 0 : i32
    return %c0_i32, %c0_i32_0 : i32, i32
  }
  func.func @transform_6(%arg0: i32) -> (i32, i32) {
    %c0_i32 = arith.constant 0 : i32
    %c0_i32_0 = arith.constant 0 : i32
    %c0_i32_1 = arith.constant 0 : i32
    return %c0_i32, %c0_i32_0 : i32, i32
  }
  func.func @transform_7(%arg0: i32) -> (i32, i32) {
    %c0_i32 = arith.constant 0 : i32
    %c0_i32_0 = arith.constant 0 : i32
    %c0_i32_1 = arith.constant 0 : i32
    return %c0_i32, %c0_i32_0 : i32, i32
  }
  func.func @transform_8(%arg0: i32) -> (i32, i32) {
    %c0_i32 = arith.constant 0 : i32
    %c0_i32_0 = arith.constant 0 : i32
    %c0_i32_1 = arith.constant 0 : i32
    return %c0_i32, %c0_i32_0 : i32, i32
  }
  func.func @transform_9(%arg0: i32) -> (i32, i32) {
    %c0_i32 = arith.constant 0 : i32
    %c0_i32_0 = arith.constant 0 : i32
    %c0_i32_1 = arith.constant 0 : i32
    return %c0_i32, %c0_i32_0 : i32, i32
  }
  func.func @transform_10(%arg0: i32) -> (i32, i32) {
    %c0_i32 = arith.constant 0 : i32
    %c0_i32_0 = arith.constant 0 : i32
    %c0_i32_1 = arith.constant 0 : i32
    return %c0_i32, %c0_i32_0 : i32, i32
  }
  func.func @transform_11(%arg0: i32) -> (i32, i32) {
    %c0_i32 = arith.constant 0 : i32
    %c0_i32_0 = arith.constant 0 : i32
    %c0_i32_1 = arith.constant 0 : i32
    return %c0_i32, %c0_i32_0 : i32, i32
  }
  func.func @transform_12(%arg0: i32) -> (i32, i32) {
    %c0_i32 = arith.constant 0 : i32
    %c0_i32_0 = arith.constant 0 : i32
    return %arg0, %c0_i32 : i32, i32
  }
}

</mosaic_0001>

<bundles_post_ra>
// kernel: tpu_custom_call.1
= control target key start
LH: loop header
LB: loop body
LE: loop exit
PB: predicated region body
PF: predicated region fallthrough
CT: control target
= control target key end

     0   :  { %s2894_s0 = inlined_call_operand.hbm [shape: f32[16,128], index: 0, kind: input, shape index: {}]   ;;  %s2895_s1 = inlined_call_operand.vmem [shape: f32[1,128], index: 1, kind: input, shape index: {}]   ;;  %s2896_s2 = inlined_call_operand.hbm [shape: f32[1,128], index: 2, kind: input, shape index: {}]   ;;  %s2897_s3 = inlined_call_operand.hbm [shape: f32[128,384], index: 3, kind: input, shape index: {}]   ;;  %s2898_s4 = inlined_call_operand.hbm [shape: f32[64,128], index: 4, kind: input, shape index: {}]   ;;  %s2899_s5 = inlined_call_operand.vmem [shape: f32[1,128], index: 5, kind: input, shape index: {}]   ;;  %s2900_s6 = inlined_call_operand.vmem [shape: f32[1,128], index: 6, kind: input, shape index: {}]   ;;  %s2901_s7 = inlined_call_operand.vmem [shape: f32[1,128], index: 7, kind: input, shape index: {}]   ;;  %s2902_s8 = inlined_call_operand.hbm [shape: f32[128,256], index: 8, kind: input, shape index: {}]   ;;  %s2903_s9 = inlined_call_operand.vmem [shape: f32[1,256], index: 9, kind: input, shape index: {}]   ;;  %s2904_s10 = inlined_call_operand.hbm [shape: f32[256,128], index: 10, kind: input, shape index: {}]   ;;  %s2905_s11 = inlined_call_operand.vmem [shape: f32[1,128], index: 11, kind: input, shape index: {}]   ;;  %s2906_s12 = inlined_call_operand.hbm [shape: f32[16,128], index: 12, kind: output, shape index: {}]  }
   0x1   :  { %2914 = sst [smem:[#allocation21_spill]] %s2896_s2 }
   0x2   :  { %2915 = sst [smem:[#allocation22_spill]] %s2897_s3 }
   0x3   :  { %2916 = sst [smem:[#allocation23_spill]] %s2898_s4 }
   0x4   :  { %2917 = sst [smem:[#allocation24_spill]] %s2902_s8 }
   0x5   :  { %2918 = sst [smem:[#allocation25_spill]] %s2904_s10 }
   0x6   :  { %17 = vsyncpa [#allocation3], 0 }
   0x7   :  { %19 = vsyncpa [#allocation3 + $0x1], 0 }
   0x8   :  { %20 = vsyncpa [#allocation6], 0 }
   0x9   :  { %21 = vsyncpa [#allocation9], 0 }
   0xa   :  { %22 = vsyncpa [#allocation12], 0 }
   0xb   :  { %23 = vsyncpa [#allocation4], 0 }
   0xc   :  { %25 = vsyncpa [#allocation4 + $0x1], 0  ;;  %s2546_s21 = smov 0   ;;  %s2548_s22 = smov 0  }
   0xd   :  { %s2550_s23 = smov 0   ;;  %s2552_s24 = smov 0  }
   0xe LB: > { %2919 = sst [smem:[#allocation19_spill]] %s2453_s23  ;;  %s2459_s25 = smov [#allocation5]   ;;  %s2457_s24 = sphi %s2552_s24, %s2950_s24   ;;  %s2453_s23 = sphi %s2550_s23, %s2947_s23   ;;  %s2449_s22 = sphi %s2548_s22, %s2949_s22   ;;  %s2445_s21 = sphi %s2546_s21, %s2948_s21  }
   0xf   : > { %s335_s26 = sshll.u32 %s2459_s25, 4  ;;  %s2567_s27 = sadd.s32 4294967295, %s2457_s24   ;;  %s336_s26 = int_to_ptr.vmem [resolvable:$true] %s335_s26 }
  0x10   : > { %p1880_p0 = scmp.ge.s32.totalorder %s2457_s24, 1  ;;  %p2909_p1 = scmp.eq.s32.totalorder %s2567_s27, 0 }
  0x11   : > { %p319_p2 = scmp.lt.s32.totalorder %s2457_s24, 3  ;;  %s2460_s29 = smov [#allocation8]  }
  0x12   : > { %s358_s30 = sshll.u32 %s2460_s29, 4  ;;  %s2461_s14 = smov [#allocation7]   ;;  %s2579_s30 = int_to_ptr.vmem [resolvable:$true] %s358_s30 }
  0x13   : > { %p2572_p3 = pnand %p1880_p0, %p319_p2  ;;  %s345_s15 = sshll.u32 %s2461_s14, 4  ;;  %s2587_s15 = int_to_ptr.vmem [resolvable:$true] %s345_s15 }
  0x14   : > { %s2234_s17 = scalar_lea.vmem %s336_s26, 16  ;;  %s2241_s18 = scalar_lea.vmem %s336_s26, 32 }
  0x15   : > { %s2920_s28 = scalar_select %p2572_p3, 1, 0 }
  0x16   : > { %p2115_p5 = pneg %p2572_p3  ;;  %p2235_p8 = scmp.ne.s32.totalorder %s336_s26, %s2234_s17 }
  0x17   : > { %p2242_p11 = scmp.lt.s32.totalorder %s336_s26, %s336_s26  ;;  %p2243_p12 = scmp.lt.s32.totalorder %s2241_s18, %s2234_s17 }
  0x18   : > { %p2583_p6 = pnand %p2115_p5, %p2909_p1 }
  0x19   : > { %p2244_p13 = por %p2243_p12, %p2242_p11 }
  0x1a   : > { %p2591_p7 = pneg %p2583_p6 }
  0x1c   : > { %p2237_p9 = pnand %p2235_p8, %p2591_p7 }
  0x1e   : > { %p2238_p10 = pneg %p2237_p9 }
  0x20   : > { %p2245_p0 = pnand %p2244_p13, %p2238_p10 }
  0x22   : > { %2248 = shalt.err (!%p2245_p0)
}
  0x23   : > { %s2923_s2 = sld [smem:[#allocation21_spill]]  ;;  %s2260_s25 = scalar_lea.vmem %s2579_s30, 1024 }
  0x24   : > { %p2261_p2 = scmp.ne.s32.totalorder %s2579_s30, %s2260_s25  ;;  %p2268_p9 = scmp.lt.s32.totalorder %s2579_s30, %s2579_s30 }
  0x25   : > { %p2269_p11 = scmp.lt.s32.totalorder %s2260_s25, %s2260_s25 }
  0x26   : > { %p2263_p5 = pnand %p2261_p2, %p2591_p7 }
  0x27   : > { %p2270_p10 = por %p2269_p11, %p2268_p9 }
  0x28   : > { %p2264_p8 = pneg %p2263_p5 }
  0x29   : > { %2118 = dma.hbm_to_vmem [thread:$0]  (!%p2583_p6), %s2923_s2, 16, %s336_s26, [#allocation6]  }
  0x2a   : > { %p2271_p12 = pnand %p2270_p10, %p2264_p8 }
  0x2c   : > { %2274 = shalt.err (!%p2271_p12)
}
  0x2d   : > { %s2907_s29 = smov 128   ;;  %s2908_s14 = smov 8  }
  0x2e   : > { %s2924_s4 = sld [smem:[#allocation23_spill]]  ;;  %s2286_s18 = scalar_lea.vmem %s2587_s15, 6144 }
  0x2f   : > { %p2287_p13 = scmp.ne.s32.totalorder %s2587_s15, %s2286_s18  ;;  %p2294_p5 = scmp.lt.s32.totalorder %s2587_s15, %s2587_s15 }
  0x30   : > { %p2295_p8 = scmp.lt.s32.totalorder %s2286_s18, %s2286_s18 }
  0x31   : > { %p2289_p0 = pnand %p2287_p13, %p2591_p7 }
  0x32   : > { %p2296_p9 = por %p2295_p8, %p2294_p5 }
  0x33   : > { %p2290_p2 = pneg %p2289_p0 }
  0x34   : > { %2124 = dma.hbm_to_vmem [thread:$0]  (!%p2583_p6), %s2924_s4, 1024, %s2579_s30, [#allocation9], %s2907_s29, %s2907_s29, %s2908_s14  }
  0x35   : > { %p2297_p11 = pnand %p2296_p9, %p2290_p2 }
  0x37   : > { %2300 = shalt.err (!%p2297_p11)
}
  0x38   : > { %s2464_s19 = smov 384   ;;  %s2465_s20 = smov 24  }
  0x39   : > { %s2925_s3 = sld [smem:[#allocation22_spill]]  ;;  %s2466_s30 = smov [#allocation10]  }
  0x3a   : > { %s380_s17 = sshll.u32 %s2466_s30, 4  ;;  %s381_s17 = int_to_ptr.vmem [resolvable:$true] %s380_s17 }
  0x3b   : > { %s2312_s29 = scalar_lea.vmem %s381_s17, 4096  ;;  %p2320_p0 = scmp.lt.s32.totalorder %s381_s17, %s381_s17 }
  0x3c   : > { %p2313_p10 = scmp.ne.s32.totalorder %s381_s17, %s2312_s29  ;;  %p2321_p2 = scmp.lt.s32.totalorder %s2312_s29, %s2312_s29 }
  0x3e   : > { %p2315_p12 = pnand %p2313_p10, %p2591_p7  ;;  %p2322_p5 = por %p2321_p2, %p2320_p0 }
  0x3f   : > { %2121 = dma.hbm_to_vmem [thread:$0]  (!%p2583_p6), %s2925_s3, 6144, %s2587_s15, [#allocation6], %s2464_s19, %s2464_s19, %s2465_s20  }
  0x40   : > { %p2316_p13 = pneg %p2315_p12 }
  0x42   : > { %p2323_p8 = pnand %p2322_p5, %p2316_p13 }
  0x44   : > { %2326 = shalt.err (!%p2323_p8)
}
  0x45   : > { %s2467_s18 = smov 256   ;;  %s2468_s14 = smov 16  }
  0x46   : > { %s2926_s8 = sld [smem:[#allocation24_spill]]  ;;  %s2469_s19 = smov [#allocation11]  }
  0x47   : > { %s396_s20 = sshll.u32 %s2469_s19, 4  ;;  %s397_s20 = int_to_ptr.vmem [resolvable:$true] %s396_s20 }
  0x48   : > { %s2338_s26 = scalar_lea.vmem %s397_s20, 4096  ;;  %p2346_p12 = scmp.lt.s32.totalorder %s397_s20, %s397_s20 }
  0x49   : > { %p2339_p9 = scmp.ne.s32.totalorder %s397_s20, %s2338_s26  ;;  %p2347_p13 = scmp.lt.s32.totalorder %s2338_s26, %s2338_s26 }
  0x4b   : > { %p2341_p11 = pnand %p2339_p9, %p2591_p7  ;;  %p2348_p0 = por %p2347_p13, %p2346_p12 }
  0x4c   : > { %2127 = dma.hbm_to_vmem [thread:$0]  (!%p2583_p6), %s2926_s8, 4096, %s381_s17, [#allocation9], %s2467_s18, %s2467_s18, %s2468_s14  }
  0x4d   : > { %p2342_p10 = pneg %p2341_p11 }
  0x4f   : > { %p2349_p2 = pnand %p2348_p0, %p2342_p10 }
  0x51   : > { %2352 = shalt.err (!%p2349_p2)
}
  0x52   : > { %s2927_s29 = smov 8   ;;  %s2928_s30 = smov 128  }
  0x53   : > { %s2929_s10 = sld [smem:[#allocation25_spill]]  ;;  %s1879_s13 = sadd.s32 4294967294, %s2457_s24  }
  0x54   : > { %s2648_s16 = sadd.s32 1, %s2457_s24   ;;  %s38_s17 = sadd.s32 1, %s2453_s23 }
  0x55   : > { %s35_s18 = ssub.s32 %s2457_s24, %s2648_s16  ;;  %p45_p7 = scmp.ne.s32.totalorder %s2453_s23, %s2449_s22 }
  0x56   : > { %p36_p5 = scmp.eq.s32.totalorder %s35_s18, 0  ;;  %p46_p8 = scmp.eq.s32.totalorder %s2457_s24, 0 }
  0x57   : > { %p51_p9 = scmp.ne.s32.totalorder %s2449_s22, %s2445_s21  ;;  %p306_p11 = scmp.eq.s32.totalorder %s2567_s27, 1 }
  0x58   : > { %s2660_s15 = scalar_select %p36_p5, %s2453_s23, %s38_s17  }
  0x59   : > { %2130 = dma.hbm_to_vmem [thread:$0]  (!%p2583_p6), %s2929_s10, 4096, %s397_s20, [#allocation12], %s2928_s30, %s2928_s30, %s2927_s29  }
  0x5a   : > { %2930 = sst [smem:[#allocation20_spill]] %s2660_s15  ;;  %p47_p10 = por %p46_p8, %p45_p7 }
  0x5b   : > { %p2664_p12 = por %p2909_p1, %p51_p9  ;;  %p2668_p6 = por %p306_p11, %p45_p7 }
  0x5c   : > { %p312_p13 = scmp.eq.s32.totalorder %s1879_s13, 1  ;;  %p2144_p0 = scmp.lt.s32.totalorder %s2457_s24, 2 }
  0x5d   : > { %s2931_s19 = scalar_select %p2664_p12, 1, 0 }
  0x5e   : > { %s2932_s20 = scalar_select %p2668_p6, 1, 0 }
  0x5f   : > { %s413_s26 = sand.u32 1, %s2453_s23   ;;  %p2674_p2 = por %p312_p13, %p51_p9 }
  0x60   : > { %s1887_s30 = sshll.u32 %s413_s26, 3  ;;  %s1888_s25 = sshll.u32 %s2457_s24, 7 }
  0x61   : > { %s2933_s29 = scalar_select %p2674_p2, 1, 0 }
  0x62   : > { %s2682_s18 = scalar_lea.hbm %s2894_s0, %s1888_s25  ;;  %s417_s2 = scalar_lea.vmem [#allocation2], %s1887_s30 }
  0x63   : > { %s424_s3 = sshll.u32 %s417_s2, 4  ;;  %p2684_p7 = pnand %p2144_p0, %p47_p10  ;;  %s425_s3 = int_to_ptr.vmem [resolvable:$true] %s424_s3 }
  0x64   : > { %s414_s4 = scalar_lea.sflag [#allocation3], %s413_s26  ;;  %s2353_s8 = scalar_lea.hbm %s2682_s18, 128 }
  0x65   : > { %p2354_p5 = scmp.ne.s32.totalorder %s2682_s18, %s2353_s8  ;;  %p2355_p8 = pneg %p2684_p7 }
  0x66   : > { %s2358_s17 = scalar_lea.hbm %s2894_s0, 256  ;;  %p2359_p10 = scmp.lt.s32.totalorder %s2682_s18, %s2894_s0 }
  0x67   : > { %p2356_p9 = pnand %p2355_p8, %p2354_p5  ;;  %p2360_p13 = scmp.lt.s32.totalorder %s2358_s17, %s2353_s8 }
  0x69   : > { %p2357_p11 = pneg %p2356_p9  ;;  %p2361_p0 = por %p2360_p13, %p2359_p10 }
  0x6b   : > { %p2362_p4 = pnand %p2361_p0, %p2357_p11 }
  0x6d   : > { %2365 = shalt.err (!%p2362_p4)
}
  0x6e   : > { %s2366_s2 = scalar_lea.vmem %s425_s3, 128  ;;  %s2470_s26 = smov [#allocation2]  }
  0x6f   : > { %p2367_p1 = scmp.ne.s32.totalorder %s425_s3, %s2366_s2  ;;  %s2371_s15 = sshll.u32 %s2470_s26, 4  ;;  %s2372_s15 = int_to_ptr.vmem [resolvable:$false] %s2371_s15 }
  0x70   : > { %s2373_s23 = scalar_lea.vmem %s2372_s15, 256  ;;  %p2374_p5 = scmp.lt.s32.totalorder %s425_s3, %s2372_s15 }
  0x71   : > { %p2369_p2 = pnand %p2367_p1, %p2355_p8  ;;  %p2375_p9 = scmp.lt.s32.totalorder %s2373_s23, %s2366_s2 }
  0x73   : > { %p2370_p6 = pneg %p2369_p2  ;;  %p2376_p12 = por %p2375_p9, %p2374_p5 }
  0x75   : > { %p2377_p3 = pnand %p2376_p12, %p2370_p6 }
  0x77   : > { %2380 = shalt.err (!%p2377_p3)
}
  0x78   : > { %2134 = dma.hbm_to_vmem [thread:$0]  (!%p2684_p7), %s2682_s18, 128, %s425_s3, %s414_s4  }
  0x79   : > { %p2935_p11 = scmp.ne.s32.totalorder %s2920_s28, 0 }
  0x7a   : > { %s2705_s8 = sand.u32 (!%p2935_p11), 1, %s2449_s22   ;;  %p2936_p1 = scmp.ne.s32.totalorder (!%p2935_p11), %s2931_s19, 0 }
  0x7b   : > { %433 = sbr.rel (%p2935_p11) target bundleno = 2618 (0xa3a), region = 68  ;;  %s1890_s10 = sshll.u32 (!%p2935_p11), %s2705_s8, 3 }
  0x7c   : > { %s436_s15 = scalar_lea.sflag (!%p2935_p11), [#allocation3], %s2705_s8  ;;  %s439_s23 = scalar_lea.vmem (!%p2935_p11), [#allocation2], %s1890_s10 }
  0x80   : > { %2424 = dma.done.wait (%p2936_p1), %s436_s15, 128  }
  0x81   : > { %2426 = vsyncadd (%p2936_p1), %s436_s15, 4294967168  ;;  %p2937_p3 = scmp.eq.s32.totalorder %s2567_s27, 0 }
  0x83   : > { %2428 = dma.done.wait (%p2937_p3), [#allocation6], 6160   ;;  %p2938_p4 = pmov %p2937_p3 }
  0x84   : > { %p2939_p12 = pmov %p2937_p3 }
  0x85   : > { %2430 = vsyncadd (%p2938_p4), [#allocation6], 4294961136 }
  0x86   : > { %2432 = dma.done.wait (%p2939_p12), [#allocation9], 5120   ;;  %p2940_p6 = pmov %p2937_p3 }
  0x87   : > { %p2941_p2 = pmov %p2937_p3 }
  0x88   : > { %2434 = vsyncadd (%p2940_p6), [#allocation9], 4294962176 }
  0x89   : > { %2436 = dma.done.wait (%p2941_p2), [#allocation12], 4096   ;;  %p2942_p7 = pmov %p2941_p2 }
  0x8a   : > { %v2471_v0 = vmov 0.0   ;;  %v2729_v1 = vld [vmem:[%s439_s23] sm:$0xff]  ;;  %v574_v8 = vld [vmem:[#allocation7 + $0x160] sm:$0xff]  ;;  %vm2472_vm0 = vmmov 0   ;;  %v1898_v62 = vld [vmem:[#allocation5] ss:$0 sm:$0xff] }
  0x8b   : > { %2438 = vsyncadd (%p2942_p7), [#allocation12], 4294963200  ;;  %1997 = vmatprep.subr.mxu1 %v2471_v0  ;;  %642 = vmatprep.mubr.f32.mxu0 %v2471_v0  ;;  %v576_v2 = vld [vmem:[#allocation7 + $0x170] sm:$0xff]  ;;  %v575_v3 = vld [vmem:[#allocation7 + $0x168] sm:$0xff]  ;;  %v506_v4 = vmul.f32 %v2729_v1, %v2729_v1  ;;  %vm725_vm1 = vcmask 130048   ;;  %s2473_s28 = smov 112  }
  0x8c   : > { %503 = vadd.xlane.f32.xlu0 %v2729_v1  ;;  %578 = vmatprep.subr.mxu0 %v576_v2  ;;  %v577_v5 = vld [vmem:[#allocation7 + $0x178] sm:$0xff]  ;;  %v572_v7 = vld [vmem:[#allocation7 + $0x150] sm:$0xff]  ;;  %v570_v9 = vld [vmem:[#allocation7 + $0x140] sm:$0xff]  ;;  %s2474_s19 = smov 80   ;;  %vm802_vm3 = vcmask 64512   ;;  %s2476_s18 = smov 96  }
  0x8d   : > { %579 = vmatpush1.msra.mxu0 %v575_v3  ;;  %1998 = vmatpush3.msra.mxu1 %v577_v5  ;;  %v573_v6 = vld [vmem:[#allocation7 + $0x158] sm:$0xff]  ;;  %v571_v11 = vld [vmem:[#allocation7 + $0x148] sm:$0xff]  ;;  %v566_v13 = vld [vmem:[#allocation7 + $0x120] sm:$0xff]  ;;  %s2477_s13 = smov 16   ;;  %s2478_s25 = smov 32   ;;  %vm1396_vm4 = vcmask 261120  }
  0x8e   : > { %1999 = vmatprep.subr.mxu1 %v2471_v0  ;;  %580 = vmatprep.subr.mxu0 %v573_v6  ;;  %v569_v10 = vld [vmem:[#allocation7 + $0x138] sm:$0xff]  ;;  %v567_v12 = vld [vmem:[#allocation7 + $0x128] sm:$0xff]  ;;  %v568_v14 = vld [vmem:[#allocation7 + $0x130] sm:$0xff]  ;;  %s2479_s14 = smov 48   ;;  %vm1398_vm5 = vcmask 392192   ;;  %vm1415_vm6 = vcmask 523264  }
  0x8f   : > { %581 = vmatpush1.msra.mxu0 %v572_v7  ;;  %2000 = vmatpush3.msra.mxu1 %v574_v8  ;;  %v564_v15 = vld [vmem:[#allocation7 + $0x110] sm:$0xff]  ;;  %v563_v16 = vld [vmem:[#allocation7 + $0x108] sm:$0xff]  ;;  %v565_v17 = vld [vmem:[#allocation7 + $0x118] sm:$0xff]  ;;  %v719_v7 = vlaneseq  ;;  %s1748_s2 = scalar_lea.sflag [#allocation4], %s2705_s8  ;;  %p2943_p10 = scmp.ne.s32.totalorder %s2932_s20, 0 }
  0x90   : > { %507 = vadd.xlane.f32.xlu0 %v506_v4  ;;  %582 = vmatprep.subr.mxu0 %v570_v9  ;;  %v561_v18 = vld [vmem:[#allocation7 + $0xf8] sm:$0xff]  ;;  %v560_v19 = vld [vmem:[#allocation7 + $0xf0] sm:$0xff]  ;;  %v562_v20 = vld [vmem:[#allocation7 + $0x100] sm:$0xff]  ;;  %s2480_s15 = smov [#allocation13]  }
  0x91   : > { %2001 = vmatprep.subr.mxu1 %v2471_v0  ;;  %583 = vmatpush1.msra.mxu0 %v569_v10  ;;  %v558_v21 = vld [vmem:[#allocation7 + $0xe0] sm:$0xff]  ;;  %v557_v22 = vld [vmem:[#allocation7 + $0xd8] sm:$0xff]  ;;  %v559_v23 = vld [vmem:[#allocation7 + $0xe8] sm:$0xff]  ;;  %v2772_v8 = vshrl.u32 %v719_v7, 7  ;;  %v722_v9 = vand.u32 127, %v719_v7 }
  0x92   : > { %2002 = vmatpush3.msra.mxu1 %v571_v11  ;;  %584 = vmatprep.subr.mxu0 %v567_v12  ;;  %v555_v24 = vld [vmem:[#allocation7 + $0xc8] sm:$0xff]  ;;  %v554_v25 = vld [vmem:[#allocation7 + $0xc0] sm:$0xff]  ;;  %v556_v26 = vld [vmem:[#allocation7 + $0xd0] sm:$0xff]  ;;  %v2475_v10 = vmov -1e+30  }
  0x93   : > { %2003 = vmatprep.subr.mxu1 %v2471_v0  ;;  %585 = vmatpush1.msra.mxu0 %v566_v13  ;;  %v552_v27 = vld [vmem:[#allocation7 + $0xb0] sm:$0xff]  ;;  %v551_v28 = vld [vmem:[#allocation7 + $0xa8] sm:$0xff]  ;;  %v553_v29 = vld [vmem:[#allocation7 + $0xb8] sm:$0xff]  ;;  %vm723_vm2 = vcmp.ge.s32.totalorder %v2772_v8, %v722_v9 }
  0x94   : > { %2004 = vmatpush3.msra.mxu1 %v568_v14  ;;  %586 = vmatprep.subr.mxu0 %v564_v15  ;;  %v549_v30 = vld [vmem:[#allocation7 + $0x98] sm:$0xff]  ;;  %v548_v31 = vld [vmem:[#allocation7 + $0x90] sm:$0xff]  ;;  %v550_v32 = vld [vmem:[#allocation7 + $0xa0] sm:$0xff]  ;;  %v724_v11 = vsel %vm723_vm2, 0.0, %v2475_v10 }
  0x95   : > { %2005 = vmatprep.subr.mxu1 %v2471_v0  ;;  %587 = vmatpush1.msra.mxu0 %v563_v16  ;;  %v546_v33 = vld [vmem:[#allocation7 + $0x80] sm:$0xff]  ;;  %v545_v34 = vld [vmem:[#allocation7 + $0x78] sm:$0xff]  ;;  %v547_v35 = vld [vmem:[#allocation7 + $0x88] sm:$0xff] }
  0x96   : > { %2006 = vmatpush3.msra.mxu1 %v565_v17  ;;  %588 = vmatprep.subr.mxu0 %v561_v18  ;;  %v543_v36 = vld [vmem:[#allocation7 + $0x68] sm:$0xff]  ;;  %v542_v37 = vld [vmem:[#allocation7 + $0x60] sm:$0xff]  ;;  %v544_v38 = vld [vmem:[#allocation7 + $0x70] sm:$0xff] }
  0x97   : > { %2007 = vmatprep.subr.mxu1 %v2471_v0  ;;  %589 = vmatpush1.msra.mxu0 %v560_v19  ;;  %v540_v39 = vld [vmem:[#allocation7 + $0x50] sm:$0xff]  ;;  %v539_v40 = vld [vmem:[#allocation7 + $0x48] sm:$0xff]  ;;  %v541_v41 = vld [vmem:[#allocation7 + $0x58] sm:$0xff] }
  0x98   : > { %2008 = vmatpush3.msra.mxu1 %v562_v20  ;;  %590 = vmatprep.subr.mxu0 %v558_v21  ;;  %v537_v42 = vld [vmem:[#allocation7 + $0x38] sm:$0xff]  ;;  %v536_v43 = vld [vmem:[#allocation7 + $0x30] sm:$0xff]  ;;  %v538_v44 = vld [vmem:[#allocation7 + $0x40] sm:$0xff] }
  0x99   : > { %2009 = vmatprep.subr.mxu1 %v2471_v0  ;;  %591 = vmatpush1.msra.mxu0 %v557_v22  ;;  %v534_v45 = vld [vmem:[#allocation7 + $0x20] sm:$0xff]  ;;  %v533_v46 = vld [vmem:[#allocation7 + $0x18] sm:$0xff]  ;;  %v535_v47 = vld [vmem:[#allocation7 + $0x28] sm:$0xff] }
  0x9a   : > { %2010 = vmatpush3.msra.mxu1 %v559_v23  ;;  %592 = vmatprep.subr.mxu0 %v555_v24  ;;  %v531_v48 = vld [vmem:[#allocation7 + $0x8] sm:$0xff]  ;;  %v530_v49 = vld [vmem:[#allocation7] sm:$0xff]  ;;  %v532_v50 = vld [vmem:[#allocation7 + $0x10] sm:$0xff] }
  0x9b   : > { %2011 = vmatprep.subr.mxu1 %v2471_v0  ;;  %593 = vmatpush1.msra.mxu0 %v554_v25  ;;  %v1897_v60 = vld [vmem:[%s2895_s1] ss:$0 sm:$0xff]  ;;  %v1407_v10 = vld [vmem:[#allocation8 + $0x38] sm:$0xff] }
  0x9c   : > { %2012 = vmatpush3.msra.mxu1 %v556_v26  ;;  %594 = vmatprep.subr.mxu0 %v552_v27 }
  0x9d   : > { %2013 = vmatprep.subr.mxu1 %v2471_v0  ;;  %595 = vmatpush1.msra.mxu0 %v551_v28 }
  0x9e   : > { %2014 = vmatpush3.msra.mxu1 %v553_v29  ;;  %596 = vmatprep.subr.mxu0 %v549_v30 }
  0x9f   : > { %2015 = vmatprep.subr.mxu1 %v2471_v0  ;;  %597 = vmatpush1.msra.mxu0 %v548_v31 }
  0xa0   : > { %2016 = vmatpush3.msra.mxu1 %v550_v32  ;;  %598 = vmatprep.subr.mxu0 %v546_v33 }
  0xa1   : > { %2017 = vmatprep.subr.mxu1 %v2471_v0  ;;  %599 = vmatpush1.msra.mxu0 %v545_v34 }
  0xa2   : > { %2018 = vmatpush3.msra.mxu1 %v547_v35  ;;  %600 = vmatprep.subr.mxu0 %v543_v36 }
  0xa3   : > { %2019 = vmatprep.subr.mxu1 %v2471_v0  ;;  %601 = vmatpush1.msra.mxu0 %v542_v37 }
  0xa4   : > { %2020 = vmatpush3.msra.mxu1 %v544_v38  ;;  %602 = vmatprep.subr.mxu0 %v540_v39 }
  0xa5   : > { %2021 = vmatprep.subr.mxu1 %v2471_v0  ;;  %603 = vmatpush1.msra.mxu0 %v539_v40 }
  0xa6   : > { %2022 = vmatpush3.msra.mxu1 %v541_v41  ;;  %604 = vmatprep.subr.mxu0 %v537_v42 }
  0xa7   : > { %2023 = vmatprep.subr.mxu1 %v2471_v0  ;;  %605 = vmatpush1.msra.mxu0 %v536_v43 }
  0xa8   : > { %2024 = vmatpush3.msra.mxu1 %v538_v44  ;;  %606 = vmatprep.subr.mxu0 %v534_v45 }
  0xa9   : > { %2025 = vmatprep.subr.mxu1 %v2471_v0  ;;  %607 = vmatpush1.msra.mxu0 %v533_v46 }
  0xaa   : > { %2026 = vmatpush3.msra.mxu1 %v535_v47  ;;  %608 = vmatprep.subr.mxu0 %v531_v48 }
  0xab   : > { %2027 = vmatprep.subr.mxu1 %v2471_v0  ;;  %609 = vmatpush1.msra.mxu0 %v530_v49 }
  0xac   : > { %2028 = vmatpush3.msra.mxu1 %v532_v50  ;;  %2029 = vmatprep.mubr.msk.f32.mxu1 %vm2472_vm0, %v2471_v0 }
  0xad   : > { %2032 = vmatprep.subr.mxu1 %v2471_v0  ;;  %2052 = vmatprep.subr.mxu0 %v2471_v0 }
 0x115   : > { %v504_v51 = vpop.xlane.xlu0 %503 }
 0x116   : > { %v505_v52 = vmul.f32 0.015625, %v504_v51 }
 0x118   : > { %v510_v54 = vmul.f32 %v505_v52, %v505_v52  ;;  %v512_v58 = vsub.f32 %v2729_v1, %v505_v52 }
 0x119   : > { %v508_v53 = vpop.xlane.xlu0 %507 }
 0x11a   : > { %v509_v55 = vmul.f32 0.015625, %v508_v53 }
 0x11c   : > { %v511_v56 = vsub.f32 %v509_v55, %v510_v54 }
 0x11e   : > { %v513_v57 = vadd.f32 1e-05, %v511_v56 }
 0x120   : > { %2203 = vrsqrt.f32 %v513_v57 }
 0x12d   : > { %v2204_v59 = vpop.eup %2203 }
 0x12e   : > { %v515_v61 = vmul.f32 %v2204_v59, %v512_v58 }
 0x130   : > { %v522_v63 = vmul.f32 %v1897_v60, %v515_v61 }
 0x132   : > { %v529_v2 = vadd.f32 %v1898_v62, %v522_v63 }
 0x134   : > { %643 = vmatmul.mubr.f32.vlgmr.msra.gmra.mxu0 %v529_v2  ;;  %2030 = vmatmul.mubr.f32.vlgmr.msra.gmra.mxu1 %v529_v2 }
 0x135   : > { %2034 = vmatprep.mubr.msk.f32.mxu1 %vm2472_vm0, %v2471_v0  ;;  %2054 = vmatprep.mubr.msk.f32.mxu0 %vm2472_vm0, %v2471_v0 }
 0x1f4   : > { %v644_v3 = vpop.f32.mrf.mxu0  ;;  %v2761_v4 = vpop.f32.mrf.mxu1 }
 0x1f6   : > { %v646_v5 = vpop.f32.mrf.mxu0  ;;  %v2031_v6 = vpop.f32.mrf.mxu1 }
 0x1f7   : > { %889 = vrot.lane.b32.xlu0 %v646_v5, %s2473_s28  ;;  %2033 = vmatpush3.xpose.msk.msra.mxu1 %vm725_vm1, %v646_v5 }
 0x1f8   : > { %2037 = vmatprep.subr.mxu1 %v2471_v0 }
 0x1fa   : > { %2035 = vmatmul.mubr.msk.f32.vlgmr.msra.gmra.mxu1 %vm725_vm1, %v644_v3 }
 0x1fb   : > { %1220 = vrot.lane.b32.xlu0 %v646_v5, %s2474_s19  ;;  %2038 = vmatpush3.msra.mxu1 %v2761_v4 }
 0x1fc   : > { %2039 = vmatprep.mubr.msk.f32.mxu1 %vm2472_vm0, %v2471_v0  ;;  %2042 = vmatprep.subr.mxu1 %v2471_v0 }
 0x269   : > { %v890_v23 = vpop.permute.xlu0 %889 }
 0x26d   : > { %v1221_v26 = vpop.permute.xlu0 %1220 }
 0x2ba   : > { %v798_v12 = vpop.f32.mrf.mxu1 }
 0x2bb   : > { %v799_v13 = vadd.f32 %v798_v12, %v724_v11  ;;  %v1405_v12 = vld [vmem:[#allocation8 + $0x28] sm:$0xff] }
 0x2bc   : > { %v2036_v14 = vpop.f32.mrf.mxu1 }
 0x2bd   : > { %v803_v15 = vsel %vm802_vm3, %v799_v13, -inf  ;;  %v1403_v14 = vld [vmem:[#allocation8 + $0x18] sm:$0xff] }
 0x2be   : > { %804 = vmax.xlane.f32.xlu1 %v803_v15  ;;  %v1402_v15 = vld [vmem:[#allocation8 + $0x10] sm:$0xff] }
 0x2cf   : > { %887 = vrot.lane.b32.xlu1 %v644_v3, %s2473_s28 }
 0x2d3   : > { %1055 = vrot.lane.b32.xlu1 %v646_v5, %s2476_s18 }
 0x347   : > { %v805_v16 = vpop.xlane.xlu1 %804 }
 0x348   : > { %v806_v17 = vsub.f32 %v799_v13, %v805_v16  ;;  %v1404_v13 = vld [vmem:[#allocation8 + $0x20] sm:$0xff]  ;;  %v1401_v16 = vld [vmem:[#allocation8 + $0x8] sm:$0xff] }
 0x34a   : > { %v807_v18 = vmul.f32 1.442695, %v806_v17  ;;  %v1400_v17 = vld [vmem:[#allocation8] sm:$0xff] }
 0x34b   : > { %v888_v19 = vpop.permute.xlu1 %887 }
 0x34c   : > { %2205 = vpow2.f32 %v807_v18 }
 0x34f   : > { %v1056_v20 = vpop.permute.xlu1 %1055 }
 0x350   : > { %2053 = vmatpush3.xpose.msk.msra.mxu0 %vm725_vm1, %v1056_v20 }
 0x351   : > { %2062 = vmatprep.subr.mxu0 %v2471_v0 }
 0x359   : > { %v2206_v21 = vpop.eup %2205 }
 0x35a   : > { %v809_v22 = vsel %vm802_vm3, %v2206_v21, 0.0 }
 0x35b   : > { %810 = vadd.xlane.f32.xlu1 %v809_v22 }
 0x36c   : > { %1053 = vrot.lane.b32.xlu1 %v644_v3, %s2476_s18 }
 0x370   : > { %1218 = vrot.lane.b32.xlu1 %v644_v3, %s2474_s19 }
 0x3e4   : > { %v811_v24 = vpop.xlane.xlu1 %810 }
 0x3e5   : > { %2207 = vrcp.f32 %v811_v24 }
 0x3e8   : > { %v1054_v25 = vpop.permute.xlu1 %1053 }
 0x3e9   : > { %2055 = vmatmul.mubr.msk.f32.vlgmr.msra.gmra.mxu0 %vm725_vm1, %v1054_v25 }
 0x3ea   : > { %2063 = vmatpush3.xpose.msk.msra.mxu0 %vm725_vm1, %v1221_v26  ;;  %2064 = vmatprep.mubr.msk.f32.mxu0 %vm2472_vm0, %v2471_v0 }
 0x3eb   : > { %2072 = vmatprep.subr.mxu0 %v2471_v0 }
 0x3ec   : > { %v1219_v27 = vpop.permute.xlu1 %1218 }
 0x3ed   : > { %2065 = vmatmul.mubr.msk.f32.vlgmr.msra.gmra.mxu0 %vm725_vm1, %v1219_v27 }
 0x3ee   : > { %2088 = vmatprep.mubr.msk.f32.mxu0 %vm2472_vm0, %v2471_v0  ;;  %2073 = vmatpush3.msra.mxu0 %v1407_v10  ;;  %v1649_v10 = vld [vmem:[#allocation11 + $0x68] sm:$0xff] }
 0x3ef   : > { %2074 = vmatprep.subr.mxu0 %v2471_v0 }
 0x3f2   : > { %v2208_v28 = vpop.eup %2207 }
 0x3f3   : > { %v813_v29 = vmul.f32 %v2208_v28, %v2206_v21 }
 0x3f5   : > { %2040 = vmatmul.mubr.msk.f32.vlgmr.msra.gmra.mxu1 %vm802_vm3, %v813_v29  ;;  %v1550_v29 = vld [vmem:[#allocation10 + $0xf8] sm:$0xff] }
 0x3f6   : > { %2043 = vmatpush3.xpose.msk.msra.mxu1 %vm725_vm1, %v890_v23  ;;  %2044 = vmatprep.mubr.msk.f32.mxu1 %vm2472_vm0, %v2471_v0 }
 0x3f7   : > { %2047 = vmatprep.subr.mxu1 %v2471_v0 }
 0x3f9   : > { %2045 = vmatmul.mubr.msk.f32.vlgmr.msra.gmra.mxu1 %vm725_vm1, %v888_v19 }
 0x3fa   : > { %2049 = vmatprep.mubr.msk.f32.mxu1 %vm2472_vm0, %v2471_v0 }
 0x4a9   : > { %v1127_v30 = vpop.f32.mrf.mxu0 }
 0x4aa   : > { %v1128_v31 = vadd.f32 %v1127_v30, %v724_v11  ;;  %v1549_v30 = vld [vmem:[#allocation10 + $0xf0] sm:$0xff] }
 0x4ab   : > { %v2056_v32 = vpop.f32.mrf.mxu0 }
 0x4ac   : > { %v1131_v33 = vsel %vm802_vm3, %v1128_v31, -inf  ;;  %v1547_v32 = vld [vmem:[#allocation10 + $0xe0] sm:$0xff] }
 0x4ad   : > { %1132 = vmax.xlane.f32.xlu1 %v1131_v33  ;;  %v1292_v34 = vpop.f32.mrf.mxu0  ;;  %v1911_v33 = vld [vmem:[%s2899_s5] ss:$0 sm:$0xff] }
 0x4ae   : > { %v1293_v41 = vadd.f32 %v1292_v34, %v724_v11 }
 0x4af   : > { %v2066_v35 = vpop.f32.mrf.mxu0 }
 0x4b0   : > { %v1296_v43 = vsel %vm802_vm3, %v1293_v41, -inf }
 0x4b5   : > { %v2800_v36 = vpop.f32.mrf.mxu1 }
 0x4b7   : > { %v2041_v37 = vpop.f32.mrf.mxu1 }
 0x4b9   : > { %v961_v38 = vpop.f32.mrf.mxu1 }
 0x4ba   : > { %v962_v39 = vadd.f32 %v961_v38, %v724_v11  ;;  %v1406_v11 = vld [vmem:[#allocation8 + $0x30] sm:$0xff] }
 0x4bb   : > { %v2046_v40 = vpop.f32.mrf.mxu1  ;;  %2075 = vmatpush3.msra.mxu0 %v1406_v11  ;;  %v1664_v11 = vld [vmem:[#allocation11 + $0xe0] sm:$0xff] }
 0x4bc   : > { %v965_v42 = vsel %vm802_vm3, %v962_v39, -inf  ;;  %2076 = vmatprep.subr.mxu0 %v2471_v0  ;;  %v1545_v40 = vld [vmem:[#allocation10 + $0xd0] sm:$0xff] }
 0x4bd   : > { %966 = vmax.xlane.f32.xlu0 %v965_v42  ;;  %2077 = vmatpush3.msra.mxu0 %v1405_v12  ;;  %v1543_v42 = vld [vmem:[#allocation10 + $0xc0] sm:$0xff] }
 0x4be   : > { %2078 = vmatprep.subr.mxu0 %v2471_v0  ;;  %v1648_v12 = vld [vmem:[#allocation11 + $0x60] sm:$0xff] }
 0x4bf   : > { %2079 = vmatpush3.msra.mxu0 %v1404_v13  ;;  %v1663_v13 = vld [vmem:[#allocation11 + $0xd8] sm:$0xff] }
 0x4c0   : > { %2080 = vmatprep.subr.mxu0 %v2471_v0 }
 0x4c1   : > { %1297 = vmax.xlane.f32.xlu0 %v1296_v43  ;;  %2081 = vmatpush3.msra.mxu0 %v1403_v14  ;;  %v1542_v43 = vld [vmem:[#allocation10 + $0xb8] sm:$0xff] }
 0x4c2   : > { %2082 = vmatprep.subr.mxu0 %v2471_v0  ;;  %v1647_v14 = vld [vmem:[#allocation11 + $0x58] sm:$0xff] }
 0x4c3   : > { %2083 = vmatpush3.msra.mxu0 %v1402_v15  ;;  %v1662_v15 = vld [vmem:[#allocation11 + $0xd0] sm:$0xff] }
 0x4c4   : > { %2084 = vmatprep.subr.mxu0 %v2471_v0 }
 0x4c5   : > { %2085 = vmatpush3.msra.mxu0 %v1401_v16  ;;  %v1646_v16 = vld [vmem:[#allocation11 + $0x50] sm:$0xff] }
 0x4c6   : > { %2086 = vmatprep.subr.mxu0 %v2471_v0 }
 0x4c7   : > { %2087 = vmatpush3.msra.mxu0 %v1400_v17  ;;  %v1661_v17 = vld [vmem:[#allocation11 + $0xc8] sm:$0xff] }
 0x536   : > { %v1133_v44 = vpop.xlane.xlu1 %1132 }
 0x537   : > { %v1134_v45 = vsub.f32 %v1128_v31, %v1133_v44  ;;  %v1548_v31 = vld [vmem:[#allocation10 + $0xe8] sm:$0xff]  ;;  %v1541_v44 = vld [vmem:[#allocation10 + $0xb0] sm:$0xff] }
 0x539   : > { %v1135_v46 = vmul.f32 1.442695, %v1134_v45  ;;  %v1539_v45 = vld [vmem:[#allocation10 + $0xa0] sm:$0xff] }
 0x53b   : > { %2209 = vpow2.f32 %v1135_v46  ;;  %v1538_v46 = vld [vmem:[#allocation10 + $0x98] sm:$0xff] }
 0x546   : > { %v967_v47 = vpop.xlane.xlu0 %966 }
 0x547   : > { %v968_v48 = vsub.f32 %v962_v39, %v967_v47  ;;  %v1546_v39 = vld [vmem:[#allocation10 + $0xd8] sm:$0xff]  ;;  %v1537_v47 = vld [vmem:[#allocation10 + $0x90] sm:$0xff] }
 0x548   : > { %v2210_v49 = vpop.eup %2209 }
 0x549   : > { %v969_v50 = vmul.f32 1.442695, %v968_v48  ;;  %v1137_v51 = vsel %vm802_vm3, %v2210_v49, 0.0  ;;  %v1536_v48 = vld [vmem:[#allocation10 + $0x88] sm:$0xff] }
 0x54a   : > { %1138 = vadd.xlane.f32.xlu0 %v1137_v51  ;;  %v1298_v52 = vpop.xlane.xlu0 %1297  ;;  %v1533_v51 = vld [vmem:[#allocation10 + $0x70] sm:$0xff] }
 0x54b   : > { %2211 = vpow2.f32 %v969_v50  ;;  %v1299_v53 = vsub.f32 %v1293_v41, %v1298_v52  ;;  %v1544_v41 = vld [vmem:[#allocation10 + $0xc8] sm:$0xff]  ;;  %v1534_v50 = vld [vmem:[#allocation10 + $0x78] sm:$0xff] }
 0x54c   : > { %v1532_v52 = vld [vmem:[#allocation10 + $0x68] sm:$0xff] }
 0x54d   : > { %v1300_v54 = vmul.f32 1.442695, %v1299_v53  ;;  %v1531_v53 = vld [vmem:[#allocation10 + $0x60] sm:$0xff] }
 0x54f   : > { %2213 = vpow2.f32 %v1300_v54  ;;  %v1530_v54 = vld [vmem:[#allocation10 + $0x58] sm:$0xff] }
 0x558   : > { %v2212_v55 = vpop.eup %2211 }
 0x559   : > { %v971_v56 = vsel %vm802_vm3, %v2212_v55, 0.0 }
 0x55a   : > { %972 = vadd.xlane.f32.xlu0 %v971_v56  ;;  %v1528_v56 = vld [vmem:[#allocation10 + $0x48] sm:$0xff] }
 0x55c   : > { %v2214_v57 = vpop.eup %2213 }
 0x55d   : > { %v1302_v58 = vsel %vm802_vm3, %v2214_v57, 0.0 }
 0x55e   : > { %1303 = vadd.xlane.f32.xlu1 %v1302_v58  ;;  %v1526_v58 = vld [vmem:[#allocation10 + $0x38] sm:$0xff] }
 0x56f   : > { %1142 = vrot.lane.b32.xlu1 %v2761_v4, %s2476_s18  ;;  %s1917_s18 = sshll.u32 %s2567_s27, 7  ;;  %s2385_s27 = sshll.u32 %s2480_s15, 4  ;;  %s2386_s27 = int_to_ptr.vmem [resolvable:$false] %s2385_s27 }
 0x570   : > { %977 = vrot.lane.b32.xlu0 %v2761_v4, %s2473_s28  ;;  %s1759_s30 = scalar_lea.hbm %s2906_s12, %s1917_s18 }
 0x573   : > { %1307 = vrot.lane.b32.xlu1 %v2761_v4, %s2474_s19 }
 0x5d3   : > { %v1139_v59 = vpop.xlane.xlu0 %1138 }
 0x5e3   : > { %v973_v60 = vpop.xlane.xlu0 %972 }
 0x5e4   : > { %2215 = vrcp.f32 %v973_v60  ;;  %v1524_v60 = vld [vmem:[#allocation10 + $0x28] sm:$0xff] }
 0x5e5   : > { %2217 = vrcp.f32 %v1139_v59  ;;  %v1525_v59 = vld [vmem:[#allocation10 + $0x30] sm:$0xff] }
 0x5e7   : > { %v1304_v61 = vpop.xlane.xlu1 %1303  ;;  %v978_v62 = vpop.permute.xlu0 %977 }
 0x5e8   : > { %2048 = vmatpush3.msra.mxu1 %v978_v62  ;;  %2219 = vrcp.f32 %v1304_v61  ;;  %v1523_v61 = vld [vmem:[#allocation10 + $0x20] sm:$0xff]  ;;  %v1522_v62 = vld [vmem:[#allocation10 + $0x18] sm:$0xff] }
 0x5e9   : > { %2057 = vmatprep.subr.mxu1 %v2471_v0 }
 0x5eb   : > { %v1143_v2 = vpop.permute.xlu1 %1142 }
 0x5ef   : > { %v1308_v7 = vpop.permute.xlu1 %1307 }
 0x5f1   : > { %v2216_v63 = vpop.eup %2215 }
 0x5f2   : > { %v975_v3 = vmul.f32 %v2216_v63, %v2212_v55  ;;  %v2218_v5 = vpop.eup %2217  ;;  %v1529_v55 = vld [vmem:[#allocation10 + $0x50] sm:$0xff] }
 0x5f3   : > { %v1141_v4 = vmul.f32 %v2218_v5, %v2210_v49  ;;  %v1535_v49 = vld [vmem:[#allocation10 + $0x80] sm:$0xff]  ;;  %v1521_v63 = vld [vmem:[#allocation10 + $0x10] sm:$0xff]  ;;  %v1667_v5 = vld [vmem:[#allocation11 + $0xf8] sm:$0xff] }
 0x5f4   : > { %2050 = vmatmul.mubr.msk.f32.vlgmr.msra.gmra.mxu1 %vm802_vm3, %v975_v3  ;;  %v1519_v3 = vld [vmem:[#allocation10] sm:$0xff]  ;;  %1962 = vmatprep.subr.mxu0 %v1667_v5 }
 0x5f5   : > { %2058 = vmatpush3.msra.mxu1 %v1143_v2  ;;  %2059 = vmatprep.mubr.msk.f32.mxu1 %vm2472_vm0, %v2471_v0  ;;  %v2220_v6 = vpop.eup %2219  ;;  %v1520_v2 = vld [vmem:[#allocation10 + $0x8] sm:$0xff] }
 0x5f6   : > { %2067 = vmatprep.subr.mxu1 %v2471_v0  ;;  %v1306_v9 = vmul.f32 %v2220_v6, %v2214_v57  ;;  %v1527_v57 = vld [vmem:[#allocation10 + $0x40] sm:$0xff]  ;;  %v1666_v6 = vld [vmem:[#allocation11 + $0xf0] sm:$0xff] }
 0x5f8   : > { %2060 = vmatmul.mubr.msk.f32.vlgmr.msra.gmra.mxu1 %vm802_vm3, %v1141_v4  ;;  %v1651_v4 = vld [vmem:[#allocation11 + $0x78] sm:$0xff] }
 0x5f9   : > { %2068 = vmatpush3.msra.mxu1 %v1308_v7  ;;  %2069 = vmatprep.mubr.msk.f32.mxu1 %vm2472_vm0, %v2471_v0  ;;  %v1650_v7 = vld [vmem:[#allocation11 + $0x70] sm:$0xff] }
 0x5fa   : > { %1563 = vmatprep.subr.mxu1 %v1550_v29 }
 0x5fc   : > { %2070 = vmatmul.mubr.msk.f32.vlgmr.msra.gmra.mxu1 %vm802_vm3, %v1306_v9  ;;  %v1665_v9 = vld [vmem:[#allocation11 + $0xe8] sm:$0xff] }
 0x5fd   : > { %1627 = vmatprep.mubr.f32.mxu1 %v2471_v0  ;;  %1564 = vmatpush1.msra.mxu1 %v1549_v30 }
 0x5fe   : > { %1565 = vmatprep.subr.mxu1 %v1548_v31 }
 0x5ff   : > { %1566 = vmatpush1.msra.mxu1 %v1547_v32 }
 0x600   : > { %1567 = vmatprep.subr.mxu1 %v1546_v39 }
 0x601   : > { %1568 = vmatpush1.msra.mxu1 %v1545_v40  ;;  %v1914_v40 = vld [vmem:[%s2901_s7] ss:$0 sm:$0xff] }
 0x602   : > { %1569 = vmatprep.subr.mxu1 %v1544_v41 }
 0x603   : > { %1570 = vmatpush1.msra.mxu1 %v1543_v42 }
 0x604   : > { %1571 = vmatprep.subr.mxu1 %v1542_v43  ;;  %v1655_v43 = vld [vmem:[#allocation11 + $0x98] sm:$0xff] }
 0x605   : > { %1572 = vmatpush1.msra.mxu1 %v1541_v44  ;;  %v1639_v44 = vld [vmem:[#allocation11 + $0x18] sm:$0xff] }
 0x6b4   : > { %v1049_v18 = vpop.f32.mrf.mxu1 }
 0x6b5   : > { %1384 = vrot.lane.b32.xlu1 %v1049_v18, %s2477_s13  ;;  %v1645_v18 = vld [vmem:[#allocation11 + $0x48] sm:$0xff]  ;;  %s499_s13 = scalar_lea.vmem [#allocation13], %s1890_s10  ;;  %s2387_s10 = scalar_lea.vmem %s2386_s27, 256 }
 0x6b6   : > { %v2051_v19 = vpop.f32.mrf.mxu1 }
 0x6b7   : > { %v1660_v19 = vld [vmem:[#allocation11 + $0xc0] sm:$0xff] }
 0x6b8   : > { %v1214_v20 = vpop.f32.mrf.mxu1 }
 0x6b9   : > { %1388 = vrot.lane.b32.xlu0 %v1214_v20, %s2478_s25  ;;  %v1644_v20 = vld [vmem:[#allocation11 + $0x40] sm:$0xff]  ;;  %s1761_s25 = sshll.u32 %s499_s13, 4  ;;  %s1762_s25 = int_to_ptr.vmem [resolvable:$true] %s1761_s25 }
 0x6ba   : > { %v2061_v21 = vpop.f32.mrf.mxu1  ;;  %s2381_s26 = scalar_lea.vmem %s1762_s25, 128  ;;  %p2388_p5 = scmp.lt.s32.totalorder %s1762_s25, %s2386_s27 }
 0x6bb   : > { %v1659_v21 = vld [vmem:[#allocation11 + $0xb8] sm:$0xff]  ;;  %p2382_p8 = scmp.ne.s32.totalorder %s1762_s25, %s2381_s26  ;;  %p2389_p9 = scmp.lt.s32.totalorder %s2387_s10, %s2381_s26 }
 0x6bc   : > { %v1379_v22 = vpop.f32.mrf.mxu1 }
 0x6bd   : > { %1392 = vrot.lane.b32.xlu1 %v1379_v22, %s2479_s14  ;;  %v1643_v22 = vld [vmem:[#allocation11 + $0x38] sm:$0xff]  ;;  %p2383_p13 = pnand %p2382_p8, %p2943_p10  ;;  %p2390_p11 = por %p2389_p9, %p2388_p5 }
 0x6be   : > { %v2071_v23 = vpop.f32.mrf.mxu1 }
 0x6bf   : > { %v1658_v23 = vld [vmem:[#allocation11 + $0xb0] sm:$0xff]  ;;  %p2384_p0 = pneg %p2383_p13 }
 0x6c1   : > { %p2391_p1 = pnand %p2390_p11, %p2384_p0 }
 0x727   : > { %v1385_v24 = vpop.permute.xlu1 %1384 }
 0x728   : > { %v1395_v0 = vsel %vm725_vm1, %v2800_v36, %v1385_v24  ;;  %v1642_v24 = vld [vmem:[#allocation11 + $0x30] sm:$0xff] }
 0x72b   : > { %v1389_v25 = vpop.permute.xlu0 %1388 }
 0x72c   : > { %v1397_v26 = vsel %vm1396_vm4, %v1395_v0, %v1389_v25  ;;  %v1657_v25 = vld [vmem:[#allocation11 + $0xa8] sm:$0xff] }
 0x72d   : > { %v1641_v0 = vld [vmem:[#allocation11 + $0x28] sm:$0xff] }
 0x72f   : > { %v1393_v27 = vpop.permute.xlu1 %1392 }
 0x730   : > { %v1399_v28 = vsel %vm1398_vm5, %v1397_v26, %v1393_v27  ;;  %v1656_v26 = vld [vmem:[#allocation11 + $0xa0] sm:$0xff] }
 0x731   : > { %2089 = vmatmul.mubr.msk.f32.vlgmr.msra.gmra.mxu0 %vm1415_vm6, %v1399_v28  ;;  %v1640_v27 = vld [vmem:[#allocation11 + $0x20] sm:$0xff] }
 0x732   : > { %1963 = vmatpush3.msra.mxu0 %v1651_v4 }
 0x733   : > { %1964 = vmatprep.subr.mxu0 %v1666_v6 }
 0x734   : > { %1965 = vmatpush3.msra.mxu0 %v1650_v7 }
 0x735   : > { %1966 = vmatprep.subr.mxu0 %v1665_v9 }
 0x736   : > { %1967 = vmatpush3.msra.mxu0 %v1649_v10 }
 0x737   : > { %1968 = vmatprep.subr.mxu0 %v1664_v11 }
 0x738   : > { %1969 = vmatpush3.msra.mxu0 %v1648_v12 }
 0x739   : > { %1970 = vmatprep.subr.mxu0 %v1663_v13 }
 0x73a   : > { %1971 = vmatpush3.msra.mxu0 %v1647_v14 }
 0x73b   : > { %1972 = vmatprep.subr.mxu0 %v1662_v15 }
 0x73c   : > { %1973 = vmatpush3.msra.mxu0 %v1646_v16 }
 0x73d   : > { %1974 = vmatprep.subr.mxu0 %v1661_v17 }
 0x73e   : > { %1975 = vmatpush3.msra.mxu0 %v1645_v18 }
 0x73f   : > { %1976 = vmatprep.subr.mxu0 %v1660_v19 }
 0x740   : > { %1977 = vmatpush3.msra.mxu0 %v1644_v20 }
 0x741   : > { %1978 = vmatprep.subr.mxu0 %v1659_v21 }
 0x742   : > { %1979 = vmatpush3.msra.mxu0 %v1643_v22 }
 0x743   : > { %1980 = vmatprep.subr.mxu0 %v1658_v23 }
 0x744   : > { %1981 = vmatpush3.msra.mxu0 %v1642_v24 }
 0x745   : > { %1982 = vmatprep.subr.mxu0 %v1657_v25 }
 0x746   : > { %1983 = vmatpush3.msra.mxu0 %v1641_v0 }
 0x747   : > { %1984 = vmatprep.subr.mxu0 %v1656_v26 }
 0x748   : > { %1985 = vmatpush3.msra.mxu0 %v1640_v27 }
 0x749   : > { %1986 = vmatprep.subr.mxu0 %v1655_v43 }
 0x74a   : > { %1987 = vmatpush3.msra.mxu0 %v1639_v44 }
 0x7f1   : > { %v1485_v34 = vpop.f32.mrf.mxu0 }
 0x7f2   : > { %v1486_v35 = vadd.f32 %v1911_v33, %v1485_v34 }
 0x7f3   : > { %v2090_v36 = vpop.f32.mrf.mxu0 }
 0x7f4   : > { %v2836_v37 = vadd.f32 %v1486_v35, %v2729_v1  ;;  %v1540_v1 = vld [vmem:[#allocation10 + $0xa8] sm:$0xff] }
 0x7f5   : > { %1573 = vmatprep.subr.mxu1 %v1540_v1  ;;  %v1654_v1 = vld [vmem:[#allocation11 + $0x90] sm:$0xff] }
 0x7f6   : > { %1492 = vadd.xlane.f32.xlu0 %v2836_v37  ;;  %v1495_v38 = vmul.f32 %v2836_v37, %v2836_v37  ;;  %1574 = vmatpush1.msra.mxu1 %v1539_v45  ;;  %v1638_v45 = vld [vmem:[#allocation11 + $0x10] sm:$0xff] }
 0x7f7   : > { %1575 = vmatprep.subr.mxu1 %v1538_v46  ;;  %1988 = vmatprep.subr.mxu0 %v1654_v1  ;;  %v1653_v46 = vld [vmem:[#allocation11 + $0x88] sm:$0xff] }
 0x7f8   : > { %1496 = vadd.xlane.f32.xlu1 %v1495_v38  ;;  %1576 = vmatpush1.msra.mxu1 %v1537_v47  ;;  %v1913_v38 = vld [vmem:[%s2900_s6] ss:$0 sm:$0xff] }
 0x7f9   : > { %1577 = vmatprep.subr.mxu1 %v1536_v48  ;;  %1989 = vmatpush3.msra.mxu0 %v1638_v45  ;;  %v1637_v47 = vld [vmem:[#allocation11 + $0x8] sm:$0xff]  ;;  %v1652_v48 = vld [vmem:[#allocation11 + $0x80] sm:$0xff] }
 0x7fa   : > { %1578 = vmatpush1.msra.mxu1 %v1535_v49  ;;  %1990 = vmatprep.subr.mxu0 %v1653_v46  ;;  %v1636_v49 = vld [vmem:[#allocation11] sm:$0xff] }
 0x7fb   : > { %1579 = vmatprep.subr.mxu1 %v1534_v50  ;;  %1991 = vmatpush3.msra.mxu0 %v1637_v47  ;;  %v1555_v50 = vsub.s32 0, %v2772_v8 }
 0x7fc   : > { %1580 = vmatpush1.msra.mxu1 %v1533_v51  ;;  %1992 = vmatprep.subr.mxu0 %v1652_v48  ;;  %v1551_v51 = vld [vmem:[%s2903_s9] sm:$0x3] }
 0x7fd   : > { %1581 = vmatprep.subr.mxu1 %v1532_v52  ;;  %1993 = vmatpush3.msra.mxu0 %v1636_v49  ;;  %v1559_v52 = vsub.s32 1, %v2772_v8 }
 0x7fe   : > { %1582 = vmatpush1.msra.mxu1 %v1531_v53  ;;  %v1556_v53 = vrot.slane %v1551_v51, %v1555_v50 }
 0x7ff   : > { %1583 = vmatprep.subr.mxu1 %v1530_v54  ;;  %v1560_v54 = vrot.slane %v1551_v51, %v1559_v52 }
 0x800   : > { %1584 = vmatpush1.msra.mxu1 %v1529_v55 }
 0x801   : > { %1585 = vmatprep.subr.mxu1 %v1528_v56 }
 0x802   : > { %1586 = vmatpush1.msra.mxu1 %v1527_v57 }
 0x803   : > { %1587 = vmatprep.subr.mxu1 %v1526_v58 }
 0x804   : > { %1588 = vmatpush1.msra.mxu1 %v1525_v59 }
 0x805   : > { %1589 = vmatprep.subr.mxu1 %v1524_v60 }
 0x806   : > { %1590 = vmatpush1.msra.mxu1 %v1523_v61 }
 0x807   : > { %1591 = vmatprep.subr.mxu1 %v1522_v62  ;;  %v1915_v62 = vld [vmem:[%s2905_s11] ss:$0 sm:$0xff] }
 0x808   : > { %1592 = vmatpush1.msra.mxu1 %v1521_v63 }
 0x809   : > { %1593 = vmatprep.subr.mxu1 %v1520_v2 }
 0x80a   : > { %1594 = vmatpush1.msra.mxu1 %v1519_v3 }
 0x87f   : > { %v1493_v28 = vpop.xlane.xlu0 %1492 }
 0x880   : > { %v1494_v29 = vmul.f32 0.015625, %v1493_v28 }
 0x881   : > { %v1497_v30 = vpop.xlane.xlu1 %1496 }
 0x882   : > { %v1499_v31 = vmul.f32 %v1494_v29, %v1494_v29  ;;  %v1498_v32 = vmul.f32 0.015625, %v1497_v30  ;;  %v1501_v35 = vsub.f32 %v2836_v37, %v1494_v29 }
 0x884   : > { %v1500_v33 = vsub.f32 %v1498_v32, %v1499_v31 }
 0x886   : > { %v1502_v34 = vadd.f32 1e-05, %v1500_v33 }
 0x888   : > { %2221 = vrsqrt.f32 %v1502_v34 }
 0x895   : > { %v2222_v36 = vpop.eup %2221 }
 0x896   : > { %v1504_v39 = vmul.f32 %v2222_v36, %v1501_v35 }
 0x898   : > { %v1511_v41 = vmul.f32 %v1913_v38, %v1504_v39 }
 0x89a   : > { %v1518_v42 = vadd.f32 %v1914_v40, %v1511_v41 }
 0x89c   : > { %1628 = vmatmul.mubr.f32.vlgmr.msra.gmra.mxu1 %v1518_v42 }
 0x95c   : > { %v1629_v55 = vpop.f32.mrf.mxu1 }
 0x95d   : > { %v1630_v56 = vadd.f32 %v1629_v55, %v1556_v53 }
 0x95e   : > { %v1631_v57 = vpop.f32.mrf.mxu1 }
 0x95f   : > { %v1632_v58 = vadd.f32 %v1631_v57, %v1560_v54  ;;  %v1634_v60 = vmax.f32 %v1630_v56, 0.0 }
 0x961   : > { %v1635_v59 = vmax.f32 %v1632_v58, 0.0 }
 0x963   : > { %1739 = vmatprep.mubr.f32.mxu0 %v1635_v59 }
 0x964   : > { %1740 = vmatmul.mubr.f32.vlgmr.msra.gmra.mxu0 %v1634_v60 }
 0xa24   : > { %v1994_v61 = vpop.f32.mrf.mxu0 }
 0xa26   : > { %v1995_v63 = vpop.f32.mrf.mxu0 }
 0xa27   : > { %v1996_v8 = vadd.f32 %v1995_v63, %v1994_v61 }
 0xa29   : > { %v1742_v2 = vadd.f32 %v1996_v8, %v1915_v62 }
 0xa2b   : > { %v1745_v3 = vadd.f32 %v1742_v2, %v2836_v37 }
 0xa2d   : > { %1746 = vst [vmem:[%s499_s13] sm:$0xff] %v1745_v3 }
 0xa2e   : > { %2394 = shalt.err (!%p2391_p1)
}
 0xa2f   : > { %s2395_s23 = scalar_lea.hbm %s1759_s30, 128  ;;  %s2399_s4 = scalar_lea.hbm %s2906_s12, 256 }
 0xa30   : > { %p2396_p3 = scmp.ne.s32.totalorder %s1759_s30, %s2395_s23  ;;  %p2400_p6 = scmp.lt.s32.totalorder %s1759_s30, %s2906_s12 }
 0xa31   : > { %p2401_p2 = scmp.lt.s32.totalorder %s2399_s4, %s2395_s23 }
 0xa32   : > { %p2397_p4 = pnand %p2396_p3, %p2943_p10 }
 0xa33   : > { %p2402_p7 = por %p2401_p2, %p2400_p6 }
 0xa34   : > { %p2398_p12 = pneg %p2397_p4 }
 0xa36   : > { %p2403_p8 = pnand %p2402_p7, %p2398_p12 }
 0xa38   : > { %2406 = shalt.err (!%p2403_p8)
}
 0xa39   : > { %2113 = dma.vmem_to_hbm [thread:$0]  (%p2943_p10), %s1762_s25, 128, %s1759_s30, %s1748_s2  }
 0xa3a PF: > { %s1773_s18 = sand.u32 1, %s2445_s21   ;;  %p2944_p13 = scmp.ne.s32.totalorder %s2933_s29, 0 }
 0xa3b   : > { %p2945_p0 = scmp.ge.s32.totalorder %s2457_s24, 2  ;;  %s1774_s13 = scalar_lea.sflag [#allocation4], %s1773_s18 }
 0xa3d   : > { %p2136_p5 = pnand %p2945_p0, %p2944_p13 }
 0xa3f   : > { %p2137_p9 = pneg %p2136_p5 }
 0xa41   : > { %2440 = dma.done.wait (%p2137_p9), %s1774_s13, 128  }
 0xa42   : > { %2442 = vsyncadd (%p2137_p9), %s1774_s13, 4294967168  ;;  %s2946_s14 = sld [smem:[#allocation19_spill]]  ;;  %p28_p11 = scmp.ge.s32.totalorder %s2648_s16, 4  }
 0xa43   : > { %s2947_s23 = sld [smem:[#allocation20_spill]]  ;;  %s2948_s21 = smov %s2449_s22 }
 0xa44   : > { %s2950_s24 = smov %s2648_s16  ;;  %30 = sbr.rel (!%p28_p11) target bundleno = 14 (0xe), region = 133 }
 0xa48   : > { %s2949_s22 = smov %s2946_s14 }
 0xa49   :  { %1779 = vsyncpa [#allocation3], 1 }
 0xa4a   :  { %1781 = vsyncpa [#allocation3 + $0x1], 1 }
 0xa4b   :  { %1782 = vsyncpa [#allocation6], 1 }
 0xa4c   :  { %1783 = vsyncpa [#allocation9], 1 }
 0xa4d   :  { %1784 = vsyncpa [#allocation12], 1 }
 0xa4e   :  { %1785 = vsyncpa [#allocation4], 1 }
 0xa4f   :  { %1787 = vsyncpa [#allocation4 + $0x1], 1 }

</bundles_post_ra>
